<compile_context>
chip_gen: v7x
topology: tpu7x:2x2x1
jax: 0.10.0
libtpu: 0.0.40
codegen_flags: <defaults>
</compile_context>

<pallas_src>
import jax
import jax.numpy as jnp
from jax.experimental import pallas as pl
from jax.experimental.pallas import tpu as pltpu


# f32 sigmoid saturation points (mirror torch's f32 sigmoid followed by
# BCELoss's clamp of each log term at -100):
#   x >= ~16.6355  -> sigmoid(x) rounds to exactly 1.0 -> log(1-p) = -inf -> -100
#   x <= ~-88.7228 -> exp(-x) overflows                -> sigmoid(x) = 0.0
#                                                       -> log(p)   = -inf -> -100
_SIGMOID_ONE_X = 16.635532
_SIGMOID_ZERO_X = -88.722839

# Padding logit for the flattened slab: sigmoid(-1e4) == 0 exactly in f32, so a
# padded element with target 0 contributes exactly 0.0 loss (no masking needed).
_PAD_LOGIT = -10000.0

_LANE = 128


def _round_up(n, m):
    return -(-n // m) * m


def _make_bce_kernel(block_rows, chunk_rows, valid_rows, needs_mask):
    """BCE over one (block_rows, 128) block of the flattened slab."""
    n_chunks = block_rows // chunk_rows

    def kernel(pred_ref, tgt_ref, out_ref, acc_ref):
        # Per-block accumulator (pure elementwise adds; grid axis is parallel).
        acc_ref[...] = jnp.zeros_like(acc_ref)
        block_row0 = pl.program_id(0) * block_rows

        def body(c, carry):
            start = pl.multiple_of(c * chunk_rows, chunk_rows)
            x = pred_ref[pl.ds(start, chunk_rows), :].astype(jnp.float32)
            t = tgt_ref[pl.ds(start, chunk_rows), :].astype(jnp.float32)

            # BCE in logits form: one exp + one log per element (EUP slot),
            # everything else is VPU work.
            log1p_term = jnp.log(1.0 + jnp.exp(-jnp.abs(x)))
            log_p = jnp.minimum(x, 0.0) - log1p_term       # log(sigmoid(x))
            log_1mp = jnp.minimum(-x, 0.0) - log1p_term    # log(1 - sigmoid(x))

            # Reproduce torch semantics in saturation: f32 sigmoid hits exactly
            # 0.0 / 1.0, the log becomes -inf, and BCELoss clamps it at -100.
            log_p = jnp.where(x <= _SIGMOID_ZERO_X, -100.0,
                              jnp.maximum(log_p, -100.0))
            log_1mp = jnp.where(x >= _SIGMOID_ONE_X, -100.0,
                                jnp.maximum(log_1mp, -100.0))

            # t*log_p + (1-t)*log_1mp, negated once at the final reduction.
            losses = log_1mp + t * (log_p - log_1mp)

            if needs_mask:  # only traced when the last grid block overhangs
                rows = (block_row0 + start +
                        jax.lax.broadcasted_iota(jnp.int32, (chunk_rows, _LANE), 0))
                losses = jnp.where(rows < valid_rows, losses, 0.0)

            acc_ref[...] += losses
            return carry

        jax.lax.fori_loop(0, n_chunks, body, 0)

        # One cross-lane/sublane reduction per grid step -> per-block partial.
        out_ref[...] = (-jnp.sum(acc_ref[...])).reshape(1, 1, 1)

    return kernel


def bce_loss(pred, label, *, block_rows=None, chunk_rows=256):
    """Pallas-TPU equivalent of BCE.forward(pred, label) (src/train_eval.py)."""
    B, C = pred.shape
    N = B * C

    # ---- targets (exact module semantics), materialized as int8 ------------
    if label.ndim == pred.ndim:
        tgt = label > 0                                  # binarize dense labels
    else:
        lab = label.astype(jnp.int32)
        cls_iota = jax.lax.broadcasted_iota(jnp.int32, (B, C), 1)
        tgt = jnp.logical_and(cls_iota == lab[:, None], lab[:, None] != -1)
    tgt_flat = tgt.reshape(-1).astype(jnp.int8)          # 1 B/elem HBM traffic
    pred_flat = pred.reshape(-1)                         # free row-major reshape

    # ---- lane-dense tiling of the flattened slab ----------------------------
    chunk_rows = max(32, _round_up(int(chunk_rows), 32))   # int8/bf16 tile safe
    itemsize = jnp.dtype(pred.dtype).itemsize
    if block_rows is None:
        target_bytes = 4 * 1024 * 1024      # ~4 MiB of predictions per buffer
        block_rows = max(chunk_rows,
                         (target_bytes // (_LANE * itemsize))
                         // chunk_rows * chunk_rows)
    else:
        block_rows = max(chunk_rows, _round_up(int(block_rows), chunk_rows))

    rows = -(-N // _LANE)                   # 128-lane rows needed
    block_rows = min(block_rows, _round_up(rows, chunk_rows))

    if rows <= block_rows:
        # Small input: pad it up to exactly one block; no in-kernel masking.
        rows_arr = block_rows
        needs_mask = False
    else:
        # Large input: pad only to whole 128-lane rows; mask the (possible)
        # grid-tail overhang in-kernel instead of copying the whole array.
        rows_arr = rows
        needs_mask = (rows % block_rows) != 0

    n_padded = rows_arr * _LANE
    if n_padded != N:
        pred_flat = jnp.pad(pred_flat, (0, n_padded - N),
                            constant_values=_PAD_LOGIT)
        tgt_flat = jnp.pad(tgt_flat, (0, n_padded - N), constant_values=0)

    pred2d = pred_flat.reshape(rows_arr, _LANE)
    tgt2d = tgt_flat.reshape(rows_arr, _LANE)

    grid_n = -(-rows_arr // block_rows)
    kernel = _make_bce_kernel(block_rows, chunk_rows, rows, needs_mask)

    partials = pl.pallas_call(
        kernel,
        out_shape=jax.ShapeDtypeStruct((grid_n, 1, 1), jnp.float32),
        grid=(grid_n,),
        in_specs=[pl.BlockSpec((block_rows, _LANE), lambda i: (i, 0)),
                  pl.BlockSpec((block_rows, _LANE), lambda i: (i, 0))],
        out_specs=pl.BlockSpec((1, 1, 1), lambda i: (i, 0, 0)),
        scratch_shapes=[pltpu.VMEM((chunk_rows, _LANE), jnp.float32)],
        compiler_params=pltpu.CompilerParams(
            dimension_semantics=("parallel",),   # v7x: split blocks over 2 TCs
            vmem_limit_bytes=32 * 1024 * 1024),
    )(pred2d, tgt2d)

    # Tiny final reduction (<= grid_n partials) + divide-by-batch in XLA.
    return jnp.sum(partials) / B


def _reference(pred, label):
    """Pure-JAX reference mirroring the PyTorch module."""
    B, C = pred.shape
    if label.ndim == pred.ndim:
        t = (label > 0).astype(jnp.float32)
    else:
        nb = (label != -1).astype(jnp.float32)
        idx = (nb * label.astype(jnp.float32)).astype(jnp.int32)
        t = nb[:, None] * jax.nn.one_hot(idx, C, dtype=jnp.float32)
    p = jax.nn.sigmoid(pred.astype(jnp.float32))
    lp = jnp.maximum(jnp.log(p), -100.0)
    l1p = jnp.maximum(jnp.log(1.0 - p), -100.0)
    return jnp.sum(-(t * lp + (1.0 - t) * l1p)) / B


if __name__ == "__main__":
    key = jax.random.PRNGKey(0)
    k1, k2, k3, k4, k5 = jax.random.split(key, 5)

    # Small shapes consistent with the module: (batch, num_classes).
    B, C = 2, 4
    pred = jax.random.normal(k1, (B, C), dtype=jnp.float32)

    # integer class labels, -1 = background (exercises the one-hot path)
    label_int = jnp.array([2, -1], dtype=jnp.int32)
    # dense same-shape labels (exercises the binarize path)
    label_dense = (jax.random.normal(k2, (B, C)) > 0).astype(jnp.float32)

    out1 = jax.block_until_ready(bce_loss(pred, label_int))
    out2 = jax.block_until_ready(bce_loss(pred, label_dense))
    ref1 = _reference(pred, label_int)
    ref2 = _reference(pred, label_dense)
    assert jnp.allclose(out1, ref1, rtol=1e-5, atol=1e-5), (out1, ref1)
    assert jnp.allclose(out2, ref2, rtol=1e-5, atol=1e-5), (out2, ref2)

    # Multi-block grid with an overhanging last block: exercises the parallel
    # per-block partial sums, the inner chunk loop and the tail mask.
    B2, C2 = 257, 33
    pred2 = jax.random.normal(k3, (B2, C2), dtype=jnp.float32)
    label2_int = jax.random.randint(k4, (B2,), -1, C2, dtype=jnp.int32)
    label2_dense = (jax.random.normal(k5, (B2, C2)) > 0).astype(jnp.float32)

    out3 = jax.block_until_ready(
        bce_loss(pred2, label2_int, block_rows=32, chunk_rows=32))
    out4 = jax.block_until_ready(
        bce_loss(pred2, label2_dense, block_rows=32, chunk_rows=32))
    ref3 = _reference(pred2, label2_int)
    ref4 = _reference(pred2, label2_dense)
    assert jnp.allclose(out3, ref3, rtol=1e-4, atol=1e-5), (out3, ref3)
    assert jnp.allclose(out4, ref4, rtol=1e-4, atol=1e-5), (out4, ref4)

    print("KERNEL_OK")
</pallas_src>

<mosaic_0001>
module attributes {stable_mosaic.version = 11 : i64} {
  func.func @kernel(%arg0: i32, %arg1: memref<256x128xf32, #tpu.memory_space<vmem>>, %arg2: memref<256x128xi8, #tpu.memory_space<vmem>>, %arg3: memref<1x1x1xf32, #tpu.memory_space<vmem>>, %arg4: memref<256x128xf32, #tpu.memory_space<vmem>>) attributes {dimension_semantics = [#tpu.dimension_semantics<parallel>], iteration_bounds = array<i64: 1>, scalar_prefetch = 0 : i64, scratch_operands = 1 : i64, tpu.core_type = #tpu.core_type<tc>, window_params = [{transform_indices = @transform_0, window_bounds = array<i64: 256, 128>}, {transform_indices = @transform_1, window_bounds = array<i64: 256, 128>}, {transform_indices = @transform_2, window_bounds = array<i64: 1, 1, 1>}]} {
    %cst = arith.constant 0.000000e+00 : f32
    %0 = vector.broadcast %cst : f32 to vector<256x128xf32>
    %c0 = arith.constant 0 : index
    %c0_0 = arith.constant 0 : index
    %1 = vector.load %arg4[%c0, %c0_0] : memref<256x128xf32, #tpu.memory_space<vmem>>, vector<256x128xf32>
    tpu.vector_store %arg4[%c0, %c0_0], %0 {strides = array<i32>} : memref<256x128xf32, #tpu.memory_space<vmem>>, vector<256x128xf32>,
    %c0_i32 = arith.constant 0 : i32
    %c256_i32 = arith.constant 256 : i32
    %2 = arith.muli %c0_i32, %c256_i32 : i32
    %3 = tpu.assume_multiple %2, 256 : i32
    %4 = arith.index_cast %3 : i32 to index
    %c0_1 = arith.constant 0 : index
    %5 = vector.load %arg1[%4, %c0_1] : memref<256x128xf32, #tpu.memory_space<vmem>>, vector<256x128xf32>
    %6 = arith.index_cast %3 : i32 to index
    %c0_2 = arith.constant 0 : index
    %7 = vector.load %arg2[%6, %c0_2] : memref<256x128xi8, #tpu.memory_space<vmem>>, vector<256x128xi8>
    %8 = arith.sitofp %7 : vector<256x128xi8> to vector<256x128xf32>
    %9 = math.absf %5 : vector<256x128xf32>
    %cst_3 = arith.constant 0.000000e+00 : f32
    %10 = vector.broadcast %cst_3 : f32 to vector<256x128xf32>
    %11 = arith.subf %10, %9 : vector<256x128xf32>
    %12 = math.exp %11 : vector<256x128xf32>
    %cst_4 = arith.constant 1.000000e+00 : f32
    %13 = vector.broadcast %cst_4 : f32 to vector<256x128xf32>
    %14 = arith.addf %13, %12 : vector<256x128xf32>
    %15 = math.log %14 : vector<256x128xf32>
    %cst_5 = arith.constant 0.000000e+00 : f32
    %16 = vector.broadcast %cst_5 : f32 to vector<256x128xf32>
    %17 = arith.minimumf %5, %16 : vector<256x128xf32>
    %18 = arith.subf %17, %15 : vector<256x128xf32>
    %cst_6 = arith.constant 0.000000e+00 : f32
    %19 = vector.broadcast %cst_6 : f32 to vector<256x128xf32>
    %20 = arith.subf %19, %5 : vector<256x128xf32>
    %cst_7 = arith.constant 0.000000e+00 : f32
    %21 = vector.broadcast %cst_7 : f32 to vector<256x128xf32>
    %22 = arith.minimumf %20, %21 : vector<256x128xf32>
    %23 = arith.subf %22, %15 : vector<256x128xf32>
    %cst_8 = arith.constant -88.7228394 : f32
    %24 = vector.broadcast %cst_8 : f32 to vector<256x128xf32>
    %25 = arith.cmpf ole, %5, %24 : vector<256x128xf32>
    %cst_9 = arith.constant -1.000000e+02 : f32
    %26 = vector.broadcast %cst_9 : f32 to vector<256x128xf32>
    %27 = arith.maximumf %18, %26 : vector<256x128xf32>
    %cst_10 = arith.constant -1.000000e+02 : f32
    %28 = vector.broadcast %cst_10 : f32 to vector<256x128xf32>
    %29 = arith.select %25, %28, %27 : vector<256x128xi1>, vector<256x128xf32>
    %cst_11 = arith.constant 16.6355324 : f32
    %30 = vector.broadcast %cst_11 : f32 to vector<256x128xf32>
    %31 = arith.cmpf oge, %5, %30 : vector<256x128xf32>
    %cst_12 = arith.constant -1.000000e+02 : f32
    %32 = vector.broadcast %cst_12 : f32 to vector<256x128xf32>
    %33 = arith.maximumf %23, %32 : vector<256x128xf32>
    %cst_13 = arith.constant -1.000000e+02 : f32
    %34 = vector.broadcast %cst_13 : f32 to vector<256x128xf32>
    %35 = arith.select %31, %34, %33 : vector<256x128xi1>, vector<256x128xf32>
    %36 = arith.subf %29, %35 : vector<256x128xf32>
    %37 = arith.mulf %8, %36 : vector<256x128xf32>
    %38 = arith.addf %35, %37 : vector<256x128xf32>
    %c0_14 = arith.constant 0 : index
    %c0_15 = arith.constant 0 : index
    %39 = vector.load %arg4[%c0_14, %c0_15] : memref<256x128xf32, #tpu.memory_space<vmem>>, vector<256x128xf32>
    %40 = arith.addf %39, %38 : vector<256x128xf32>
    %c0_16 = arith.constant 0 : index
    %c0_17 = arith.constant 0 : index
    %41 = vector.load %arg4[%c0_16, %c0_17] : memref<256x128xf32, #tpu.memory_space<vmem>>, vector<256x128xf32>
    tpu.vector_store %arg4[%c0_16, %c0_17], %40 {strides = array<i32>} : memref<256x128xf32, #tpu.memory_space<vmem>>, vector<256x128xf32>,
    %c1_i32 = arith.constant 1 : i32
    %c0_18 = arith.constant 0 : index
    %c0_19 = arith.constant 0 : index
    %42 = vector.load %arg4[%c0_18, %c0_19] : memref<256x128xf32, #tpu.memory_space<vmem>>, vector<256x128xf32>
    %43 = vector.shape_cast %42 : vector<256x128xf32> to vector<1x256x128xf32>
    %cst_20 = arith.constant dense<0.000000e+00> : vector<1xf32>
    %44 = vector.multi_reduction <add>, %43, %cst_20 [1, 2] : vector<1x256x128xf32> to vector<1xf32>
    %45 = vector.shape_cast %44 : vector<1xf32> to vector<1x1x1xf32>
    %46 = vector.extract %45[0, 0, 0] : f32 from vector<1x1x1xf32>
    %cst_21 = arith.constant 0.000000e+00 : f32
    %47 = arith.subf %cst_21, %46 : f32
    %48 = vector.broadcast %47 : f32 to vector<1x1x1xf32>
    %c0_22 = arith.constant 0 : index
    %c0_23 = arith.constant 0 : index
    %c0_24 = arith.constant 0 : index
    %49 = vector.load %arg3[%c0_22, %c0_23, %c0_24] : memref<1x1x1xf32, #tpu.memory_space<vmem>>, vector<1x1x1xf32>
    tpu.vector_store %arg3[%c0_22, %c0_23, %c0_24], %48 {strides = array<i32>} : memref<1x1x1xf32, #tpu.memory_space<vmem>>, vector<1x1x1xf32>,
    return
  }
  func.func @transform_0(%arg0: i32) -> (i32, i32) {
    %c0_i32 = arith.constant 0 : i32
    %c0_i32_0 = arith.constant 0 : i32
    return %arg0, %c0_i32 : i32, i32
  }
  func.func @transform_1(%arg0: i32) -> (i32, i32) {
    %c0_i32 = arith.constant 0 : i32
    %c0_i32_0 = arith.constant 0 : i32
    return %arg0, %c0_i32 : i32, i32
  }
  func.func @transform_2(%arg0: i32) -> (i32, i32, i32) {
    %c0_i32 = arith.constant 0 : i32
    %c0_i32_0 = arith.constant 0 : i32
    %c0_i32_1 = arith.constant 0 : i32
    return %arg0, %c0_i32, %c0_i32_0 : i32, i32, i32
  }
}

</mosaic_0001>

<bundles_post_ra>
// kernel: tpu_custom_call.1
= control target key start
LH: loop header
LB: loop body
LE: loop exit
PB: predicated region body
PF: predicated region fallthrough
CT: control target
= control target key end

     0   :  { %7 = vsyncpa [#allocation4], 0  ;;  %s2419_s0 = inlined_call_operand.hbm [shape: f32[256,128], index: 0, kind: input, shape index: {}]   ;;  %s2420_s1 = inlined_call_operand.hbm [shape: s8[256,128], index: 1, kind: input, shape index: {}]   ;;  %s2421_s2 = inlined_call_operand.hbm [shape: f32[1,1,1], index: 2, kind: output, shape index: {}]  }
   0x1   :  { %8 = vsyncpa [#allocation7], 0 }
   0x2   :  { %9 = vsyncpa [#allocation5], 0  ;;  %s1276_s9 = smov [#allocation3]   ;;  %s1204_s13 = scalar_lea.hbm %s2419_s0, 4096 }
   0x3   :  { %s15_s10 = sshll.u32 %s1276_s9, 4  ;;  %p1205_p0 = scmp.ne.s32.totalorder %s2419_s0, %s1204_s13  ;;  %s16_s10 = int_to_ptr.vmem [resolvable:$true] %s15_s10 }
   0x4   :  { %p1208_p1 = scmp.lt.u32.totalorder %s1204_s13, %s2419_s0 }
   0x6   :  { %p1210_p2 = pnand %p1208_p1, %p1205_p0 }
   0x8   :  { %1213 = shalt.err (!%p1210_p2)
}
   0x9   :  { %s1214_s18 = scalar_lea.vmem %s16_s10, 4096  ;;  %p1219_p4 = scmp.lt.s32.totalorder %s16_s10, %s16_s10 }
   0xa   :  { %p1215_p3 = scmp.ne.s32.totalorder %s16_s10, %s1214_s18  ;;  %p1220_p5 = scmp.lt.s32.totalorder %s1214_s18, %s1214_s18 }
   0xc   :  { %p1221_p6 = por %p1220_p5, %p1219_p4 }
   0xe   :  { %p1222_p7 = pnand %p1221_p6, %p1215_p3 }
  0x10   :  { %1225 = shalt.err (!%p1222_p7)
}
  0x11   :  { %s1277_s19 = smov 128   ;;  %s1278_s20 = smov 8  }
  0x12   :  { %21 = dma.hbm_to_vmem [thread:$0]  %s2419_s0, 4096, %s16_s10, [#allocation4], %s1277_s19, %s1277_s19, %s1278_s20  }
  0x13   :  { %s1279_s23 = smov [#allocation6]   ;;  %s1226_s27 = scalar_lea.hbm %s2420_s1, 1024 }
  0x14   :  { %s27_s24 = sshll.u32 %s1279_s23, 4  ;;  %p1227_p8 = scmp.ne.s32.totalorder %s2420_s1, %s1226_s27  ;;  %s28_s24 = int_to_ptr.vmem [resolvable:$true] %s27_s24 }
  0x15   :  { %p1230_p9 = scmp.lt.u32.totalorder %s1226_s27, %s2420_s1 }
  0x17   :  { %p1232_p10 = pnand %p1230_p9, %p1227_p8 }
  0x19   :  { %1235 = shalt.err (!%p1232_p10)
}
  0x1a   :  { %s1236_s4 = scalar_lea.vmem %s28_s24, 1024  ;;  %p1241_p12 = scmp.lt.s32.totalorder %s28_s24, %s28_s24 }
  0x1b   :  { %p1237_p11 = scmp.ne.s32.totalorder %s28_s24, %s1236_s4  ;;  %p1242_p13 = scmp.lt.s32.totalorder %s1236_s4, %s1236_s4 }
  0x1d   :  { %p1243_p0 = por %p1242_p13, %p1241_p12 }
  0x1f   :  { %p1244_p1 = pnand %p1243_p0, %p1237_p11 }
  0x21   :  { %1247 = shalt.err (!%p1244_p1)
}
  0x22   :  { %33 = dma.hbm_to_vmem [thread:$0]  %s2420_s1, 1024, %s28_s24, [#allocation7], %s1277_s19, %s1277_s19, %s1278_s20  }
  0x23   :  { %1270 = dma.done.wait [#allocation4], 4096  }
  0x24   :  { %1271 = vsyncadd [#allocation4], 4294963200 }
  0x25   :  { %1272 = dma.done.wait [#allocation7], 1024  }
  0x26   :  { %1273 = vsyncadd [#allocation7], 4294966272  ;;  %v1320_v0 = vld [vmem:[#allocation3] sm:$0xff]  ;;  %v1322_v1 = vld [vmem:[#allocation3 + $0x8] sm:$0xff]  ;;  %s1280_s1 = smov [#allocation8]  }
  0x27   :  { %2526 = vst [vmem:[#allocation12_spill] sm:$0xff] %v1320_v0  ;;  %2527 = vst [vmem:[#allocation13_spill] sm:$0xff] %v1322_v1  ;;  %v1324_v2 = vld [vmem:[#allocation3 + $0x10] sm:$0xff]  ;;  %v1326_v3 = vld [vmem:[#allocation3 + $0x18] sm:$0xff]  ;;  %v176_v7 = vand.u32 2147483647, %v1320_v0 }
  0x28   :  { %v1328_v4 = vld [vmem:[#allocation3 + $0x20] sm:$0xff]  ;;  %v1330_v5 = vld [vmem:[#allocation3 + $0x28] sm:$0xff]  ;;  %v1332_v6 = vld [vmem:[#allocation3 + $0x30] sm:$0xff]  ;;  %v177_v9 = vand.u32 2147483647, %v1322_v1  ;;  %s1026_s6 = sshll.u32 %s1280_s1, 4  ;;  %s1027_s6 = int_to_ptr.vmem [resolvable:$true] %s1026_s6 }
  0x29   :  { %v1335_v8 = vld [vmem:[#allocation3 + $0x38] sm:$0xff]  ;;  %v178_v10 = vand.u32 2147483647, %v1324_v2  ;;  %v179_v11 = vand.u32 2147483647, %v1326_v3  ;;  %v1343_v15 = vld [vmem:[#allocation3 + $0x40] sm:$0xff]  ;;  %p1253_p3 = scmp.lt.s32.totalorder %s1027_s6, %s1027_s6 }
  0x2a   :  { %v180_v12 = vand.u32 2147483647, %v1328_v4  ;;  %v181_v13 = vand.u32 2147483647, %v1330_v5  ;;  %v182_v14 = vand.u32 2147483647, %v1332_v6 }
  0x2b   :  { %v1345_v16 = vld [vmem:[#allocation3 + $0x48] sm:$0xff]  ;;  %v183_v17 = vand.u32 2147483647, %v1335_v8  ;;  %v104_v18 = vld [vmem:[#allocation6] sm:$0xff]  ;;  %v1348_v19 = vsub.f32 0.0, %v176_v7  ;;  %v1350_v20 = vsub.f32 0.0, %v177_v9 }
  0x2c   :  { %v105_v23 = vld [vmem:[#allocation6 + $0x8] sm:$0xff]  ;;  %v1354_v24 = vsub.f32 0.0, %v178_v10  ;;  %v1356_v25 = vsub.f32 0.0, %v179_v11  ;;  %v1358_v26 = vsub.f32 0.0, %v180_v12  ;;  %v1360_v27 = vsub.f32 0.0, %v181_v13  ;;  %v106_v28 = vld [vmem:[#allocation6 + $0x10] sm:$0xff] }
  0x2d   :  { %v1364_v31 = vsub.f32 0.0, %v182_v14  ;;  %v1366_v32 = vld [vmem:[#allocation6 + $0x18] sm:$0xff]  ;;  %v112_v33 = vunpack.c.0.s8 %v104_v18  ;;  %v113_v34 = vunpack.c.1.s8 %v104_v18  ;;  %v114_v35 = vunpack.c.2.s8 %v104_v18  ;;  %v1370_v37 = vld [vmem:[#allocation6 + $0x20] sm:$0xff]  ;;  %v1372_v42 = vld [vmem:[#allocation6 + $0x28] sm:$0xff]  ;;  %s1248_s9 = scalar_lea.vmem %s1027_s6, 16  ;;  %s1252_s10 = scalar_lea.vmem %s1027_s6, 32 }
  0x2e   :  { %v1368_v36 = vsub.f32 0.0, %v183_v17  ;;  %v115_v38 = vunpack.c.3.s8 %v104_v18  ;;  %v116_v39 = vunpack.c.0.s8 %v105_v23  ;;  %v117_v40 = vunpack.c.1.s8 %v105_v23  ;;  %v1374_v47 = vld [vmem:[#allocation6 + $0x30] sm:$0xff]  ;;  %v1379_v52 = vld [vmem:[#allocation6 + $0x38] sm:$0xff]  ;;  %p1249_p2 = scmp.ne.s32.totalorder %s1027_s6, %s1248_s9  ;;  %p1254_p4 = scmp.lt.s32.totalorder %s1252_s10, %s1248_s9 }
  0x2f   :  { %v118_v41 = vunpack.c.2.s8 %v105_v23  ;;  %v119_v43 = vunpack.c.3.s8 %v105_v23  ;;  %v120_v44 = vunpack.c.0.s8 %v106_v28  ;;  %v121_v45 = vunpack.c.1.s8 %v106_v28  ;;  %2528 = vst [vmem:[#allocation14_spill] sm:$0xff] %v1379_v52  ;;  %v1397_v13 = vld [vmem:[#allocation3 + $0x50] sm:$0xff]  ;;  %v1399_v14 = vld [vmem:[#allocation3 + $0x58] sm:$0xff] }
  0x30   :  { %v122_v46 = vunpack.c.2.s8 %v106_v28  ;;  %v123_v48 = vunpack.c.3.s8 %v106_v28  ;;  %v124_v49 = vunpack.c.0.s8 %v1366_v32  ;;  %v125_v50 = vunpack.c.1.s8 %v1366_v32  ;;  %p1255_p5 = por %p1254_p4, %p1253_p3 }
  0x31   :  { %v126_v51 = vunpack.c.2.s8 %v1366_v32  ;;  %v127_v53 = vunpack.c.3.s8 %v1366_v32  ;;  %v128_v54 = vunpack.c.0.s8 %v1370_v37  ;;  %v129_v55 = vunpack.c.1.s8 %v1370_v37  ;;  %v1409_v32 = vld [vmem:[#allocation3 + $0x60] sm:$0xff] }
  0x32   :  { %v130_v56 = vunpack.c.2.s8 %v1370_v37  ;;  %v131_v57 = vunpack.c.3.s8 %v1370_v37  ;;  %v132_v58 = vunpack.c.0.s8 %v1372_v42  ;;  %v133_v59 = vunpack.c.1.s8 %v1372_v42  ;;  %v1411_v37 = vld [vmem:[#allocation3 + $0x68] sm:$0xff]  ;;  %p1256_p6 = pnand %p1255_p5, %p1249_p2 }
  0x33   :  { %v134_v60 = vunpack.c.2.s8 %v1372_v42  ;;  %v135_v61 = vunpack.c.3.s8 %v1372_v42  ;;  %v136_v62 = vunpack.c.0.s8 %v1374_v47  ;;  %v1401_v17 = vcvt.s32.f32 %v112_v33  ;;  %v1413_v42 = vld [vmem:[#allocation3 + $0x70] sm:$0xff] }
  0x34   :  { %v1403_v18 = vcvt.s32.f32 %v113_v34  ;;  %v1405_v23 = vcvt.s32.f32 %v114_v35  ;;  %v1407_v28 = vcvt.s32.f32 %v115_v38  ;;  %v1415_v11 = vcvt.s32.f32 %v116_v39  ;;  %v1423_v34 = vld [vmem:[#allocation3 + $0x78] sm:$0xff]  ;;  %v1425_v35 = vld [vmem:[#allocation3 + $0x80] sm:$0xff]  ;;  %v1427_v38 = vld [vmem:[#allocation3 + $0x88] sm:$0xff] }
  0x35   :  { %2529 = vst [vmem:[#allocation15_spill] sm:$0xff] %v1401_v17  ;;  %v1417_v12 = vcvt.s32.f32 %v117_v40  ;;  %v1419_v22 = vcvt.s32.f32 %v118_v41  ;;  %v1421_v33 = vcvt.s32.f32 %v119_v43  ;;  %v1429_v21 = vcvt.s32.f32 %v120_v44  ;;  %v1437_v40 = vld [vmem:[#allocation3 + $0x90] sm:$0xff]  ;;  %v1439_v41 = vld [vmem:[#allocation3 + $0x98] sm:$0xff]  ;;  %v1441_v43 = vld [vmem:[#allocation3 + $0xa0] sm:$0xff] }
  0x36   :  { %2530 = vst [vmem:[#allocation16_spill] sm:$0xff] %v1403_v18  ;;  %2531 = vst [vmem:[#allocation17_spill] sm:$0xff] %v1405_v23  ;;  %v1431_v30 = vcvt.s32.f32 %v121_v45  ;;  %v1433_v29 = vcvt.s32.f32 %v122_v46  ;;  %v1435_v39 = vcvt.s32.f32 %v123_v48  ;;  %v1443_v10 = vcvt.s32.f32 %v124_v49  ;;  %v1451_v45 = vld [vmem:[#allocation3 + $0xa8] sm:$0xff]  ;;  %v1453_v46 = vld [vmem:[#allocation3 + $0xb0] sm:$0xff] }
  0x37   :  { %2532 = vst [vmem:[#allocation18_spill] sm:$0xff] %v1407_v28  ;;  %2533 = vst [vmem:[#allocation19_spill] sm:$0xff] %v1415_v11  ;;  %v1445_v9 = vcvt.s32.f32 %v125_v50  ;;  %v1447_v7 = vcvt.s32.f32 %v126_v51  ;;  %v1449_v44 = vcvt.s32.f32 %v127_v53  ;;  %v1455_v48 = vld [vmem:[#allocation3 + $0xb8] sm:$0xff]  ;;  %v1457_v63 = vcvt.s32.f32 %v128_v54  ;;  %v1465_v50 = vld [vmem:[#allocation3 + $0xc0] sm:$0xff] }
  0x38   :  { %2534 = vst [vmem:[#allocation20_spill] sm:$0xff] %v1417_v12  ;;  %2535 = vst [vmem:[#allocation21_spill] sm:$0xff] %v1419_v22  ;;  %v1463_v49 = vcvt.s32.f32 %v131_v57  ;;  %v1467_v51 = vld [vmem:[#allocation3 + $0xc8] sm:$0xff]  ;;  %v1469_v53 = vld [vmem:[#allocation3 + $0xd0] sm:$0xff]  ;;  %v187_v54 = vand.u32 2147483647, %v1399_v14  ;;  %v2567_v22 = vunpack.c.1.s8 %v1374_v47  ;;  %v2569_v28 = vunpack.c.2.s8 %v1374_v47 }
  0x39   :  { %2536 = vst [vmem:[#allocation22_spill] sm:$0xff] %v1421_v33  ;;  %2537 = vst [vmem:[#allocation23_spill] sm:$0xff] %v1429_v21  ;;  %v1481_v57 = vld [vmem:[#allocation3 + $0xe8] sm:$0xff]  ;;  %v195_v21 = vand.u32 2147483647, %v1439_v41  ;;  %v2571_v17 = vunpack.c.3.s8 %v1374_v47 }
  0x3a   :  { %2538 = vst [vmem:[#allocation24_spill] sm:$0xff] %v1431_v30  ;;  %2539 = vst [vmem:[#allocation25_spill] sm:$0xff] %v1433_v29  ;;  %v1461_v29 = vcvt.s32.f32 %v130_v56  ;;  %v1479_v56 = vld [vmem:[#allocation3 + $0xe0] sm:$0xff]  ;;  %v193_v30 = vand.u32 2147483647, %v1427_v38  ;;  %v1504_v12 = vcvt.s32.f32 %v2567_v22 }
  0x3b   :  { %2540 = vst [vmem:[#allocation26_spill] sm:$0xff] %v1435_v39  ;;  %2541 = vst [vmem:[#allocation27_spill] sm:$0xff] %v1439_v41  ;;  %v1459_v39 = vcvt.s32.f32 %v129_v55  ;;  %v1477_v55 = vld [vmem:[#allocation3 + $0xd8] sm:$0xff]  ;;  %v196_v33 = vand.u32 2147483647, %v1441_v43  ;;  %v1518_v22 = vcvt.s32.f32 %v2571_v17  ;;  %v227_v41 = vsub.f32 0.0, %v195_v21 }
  0x3c   :  { %2542 = vst [vmem:[#allocation28_spill] sm:$0xff] %v1441_v43  ;;  %2543 = vst [vmem:[#allocation29_spill] sm:$0xff] %v1443_v10  ;;  %v192_v10 = vand.u32 2147483647, %v1425_v35  ;;  %v199_v11 = vand.u32 2147483647, %v1455_v48 }
  0x3d   :  { %2544 = vst [vmem:[#allocation30_spill] sm:$0xff] %v1445_v9  ;;  %2545 = vst [vmem:[#allocation31_spill] sm:$0xff] %v1447_v7  ;;  %v1473_v7 = vcvt.s32.f32 %v133_v59  ;;  %v186_v9 = vand.u32 2147483647, %v1397_v13  ;;  %v1488_v59 = vld [vmem:[#allocation3 + $0xf0] sm:$0xff] }
  0x3e   :  { %2546 = vst [vmem:[#allocation32_spill] sm:$0xff] %v1449_v44  ;;  %2547 = vst [vmem:[#allocation33_spill] sm:$0xff] %v1451_v45  ;;  %v1471_v44 = vcvt.s32.f32 %v132_v58  ;;  %v190_v58 = vand.u32 2147483647, %v1413_v42  ;;  %v201_v23 = vand.u32 2147483647, %v1467_v51 }
  0x3f   :  { %2548 = vst [vmem:[#allocation34_spill] sm:$0xff] %v1453_v46  ;;  %2549 = vst [vmem:[#allocation35_spill] sm:$0xff] %v1455_v48  ;;  %v202_v18 = vand.u32 2147483647, %v1469_v53  ;;  %v204_v1 = vand.u32 2147483647, %v1479_v56  ;;  %v2573_v48 = vunpack.c.0.s8 %v1379_v52 }
  0x40   :  { %2550 = vst [vmem:[#allocation36_spill] sm:$0xff] %v1457_v63  ;;  %2551 = vst [vmem:[#allocation37_spill] sm:$0xff] %v1459_v39  ;;  %v189_v39 = vand.u32 2147483647, %v1411_v37  ;;  %v191_v63 = vand.u32 2147483647, %v1423_v34 }
  0x41   :  { %2552 = vst [vmem:[#allocation38_spill] sm:$0xff] %v1461_v29  ;;  %2553 = vst [vmem:[#allocation39_spill] sm:$0xff] %v1463_v49  ;;  %v1483_v49 = vcvt.s32.f32 %v134_v60  ;;  %v188_v29 = vand.u32 2147483647, %v1409_v32  ;;  %v1497_v60 = vcvt.s32.f32 %v136_v62  ;;  %v1511_v62 = vcvt.s32.f32 %v2569_v28 }
  0x42   :  { %2554 = vst [vmem:[#allocation40_spill] sm:$0xff] %v1465_v50  ;;  %2555 = vst [vmem:[#allocation41_spill] sm:$0xff] %v1467_v51  ;;  %v205_v0 = vand.u32 2147483647, %v1481_v57  ;;  %v1525_v28 = vcvt.s32.f32 %v2573_v48  ;;  %v2575_v47 = vand.u32 2147483647, %v1343_v15 }
  0x43   :  { %2556 = vst [vmem:[#allocation42_spill] sm:$0xff] %v1469_v53  ;;  %2557 = vst [vmem:[#allocation43_spill] sm:$0xff] %v1471_v44  ;;  %v1492_v44 = vcvt.s32.f32 %v135_v61  ;;  %v197_v61 = vand.u32 2147483647, %v1451_v45  ;;  %v240_v53 = vmul.f32 1.442695, %v1348_v19 }
  0x44   :  { %2558 = vst [vmem:[#allocation44_spill] sm:$0xff] %v1473_v7  ;;  %2559 = vst [vmem:[#allocation45_spill] sm:$0xff] %v1477_v55  ;;  %v1490_v7 = vld [vmem:[#allocation3 + $0xf8] sm:$0xff]  ;;  %v216_v17 = vsub.f32 0.0, %v2575_v47  ;;  %v221_v52 = vsub.f32 0.0, %v189_v39  ;;  %v224_v45 = vsub.f32 0.0, %v192_v10 }
  0x45   :  { %2560 = vst [vmem:[#allocation46_spill] sm:$0xff] %v1479_v56  ;;  %2561 = vst [vmem:[#allocation47_spill] sm:$0xff] %v1481_v57  ;;  %v207_v51 = vand.u32 2147483647, %v1490_v7  ;;  %v242_v56 = vmul.f32 1.442695, %v1350_v20  ;;  %1043 = vpow2.f32 %v240_v53 }
  0x46   :  { %2562 = vst [vmem:[#allocation48_spill] sm:$0xff] %v1483_v49  ;;  %2563 = vst [vmem:[#allocation49_spill] sm:$0xff] %v1488_v59  ;;  %v194_v49 = vand.u32 2147483647, %v1437_v40  ;;  %v219_v57 = vsub.f32 0.0, %v187_v54  ;;  %v225_v19 = vsub.f32 0.0, %v193_v30 }
  0x47   :  { %2564 = vst [vmem:[#allocation50_spill] sm:$0xff] %v1490_v7  ;;  %2565 = vst [vmem:[#allocation51_spill] sm:$0xff] %v1492_v44  ;;  %v198_v44 = vand.u32 2147483647, %v1453_v46  ;;  %v220_v46 = vsub.f32 0.0, %v188_v29  ;;  %1045 = vpow2.f32 %v242_v56  ;;  %v231_v39 = vsub.f32 0.0, %v199_v11 }
  0x48   :  { %2566 = vst [vmem:[#allocation52_spill] sm:$0xff] %v1497_v60  ;;  %2568 = vst [vmem:[#allocation53_spill] sm:$0xff] %v1504_v12  ;;  %v200_v60 = vand.u32 2147483647, %v1465_v50  ;;  %v203_v12 = vand.u32 2147483647, %v1477_v55 }
  0x49   :  { %2570 = vst [vmem:[#allocation54_spill] sm:$0xff] %v1511_v62  ;;  %2572 = vst [vmem:[#allocation55_spill] sm:$0xff] %v1518_v22  ;;  %v206_v62 = vand.u32 2147483647, %v1488_v59  ;;  %v2576_v22 = vand.u32 2147483647, %v1345_v16 }
  0x4a   :  { %2574 = vst [vmem:[#allocation56_spill] sm:$0xff] %v1525_v28  ;;  %v218_v50 = vsub.f32 0.0, %v186_v9  ;;  %v244_v48 = vmul.f32 1.442695, %v1354_v24  ;;  %v222_v28 = vsub.f32 0.0, %v190_v58  ;;  %v223_v59 = vsub.f32 0.0, %v191_v63 }
  0x4b   :  { %v217_v55 = vsub.f32 0.0, %v2576_v22  ;;  %v246_v7 = vmul.f32 1.442695, %v1356_v25  ;;  %v226_v43 = vsub.f32 0.0, %v194_v49  ;;  %v248_v47 = vmul.f32 1.442695, %v1358_v26 }
  0x4c   :  { %v228_v22 = vsub.f32 0.0, %v196_v33  ;;  %v250_v20 = vmul.f32 1.442695, %v1360_v27  ;;  %v229_v9 = vsub.f32 0.0, %v197_v61  ;;  %v230_v29 = vsub.f32 0.0, %v198_v44 }
  0x4d   :  { %1047 = vpow2.f32 %v244_v48  ;;  %v252_v24 = vmul.f32 1.442695, %v1364_v31  ;;  %v232_v63 = vsub.f32 0.0, %v200_v60  ;;  %v254_v25 = vmul.f32 1.442695, %v1368_v36 }
  0x4e   :  { %1049 = vpow2.f32 %v246_v7  ;;  %v233_v30 = vsub.f32 0.0, %v201_v23  ;;  %v234_v10 = vsub.f32 0.0, %v202_v18  ;;  %v256_v49 = vmul.f32 1.442695, %v216_v17 }
  0x4f   :  { %1051 = vpow2.f32 %v248_v47  ;;  %v235_v26 = vsub.f32 0.0, %v203_v12  ;;  %v236_v21 = vsub.f32 0.0, %v204_v1  ;;  %v258_v33 = vmul.f32 1.442695, %v217_v55  ;;  %v1044_v1 = vpop.eup %1043 }
  0x50   :  { %1053 = vpow2.f32 %v250_v20  ;;  %v237_v53 = vsub.f32 0.0, %v205_v0  ;;  %v238_v27 = vsub.f32 0.0, %v206_v62  ;;  %v260_v44 = vmul.f32 1.442695, %v218_v50 }
  0x51   :  { %1055 = vpow2.f32 %v252_v24  ;;  %v239_v54 = vsub.f32 0.0, %v207_v51  ;;  %v262_v31 = vmul.f32 1.442695, %v219_v57  ;;  %v264_v7 = vmul.f32 1.442695, %v220_v46  ;;  %v1046_v60 = vpop.eup %1045 }
  0x52   :  { %1057 = vpow2.f32 %v254_v25  ;;  %v266_v36 = vmul.f32 1.442695, %v221_v52  ;;  %v268_v23 = vmul.f32 1.442695, %v222_v28  ;;  %v270_v18 = vmul.f32 1.442695, %v223_v59 }
  0x53   :  { %1059 = vpow2.f32 %v256_v49  ;;  %v272_v56 = vmul.f32 1.442695, %v224_v45  ;;  %v274_v12 = vmul.f32 1.442695, %v225_v19  ;;  %v276_v55 = vmul.f32 1.442695, %v226_v43 }
  0x54   :  { %1061 = vpow2.f32 %v258_v33  ;;  %v278_v0 = vmul.f32 1.442695, %v227_v41  ;;  %v280_v58 = vmul.f32 1.442695, %v228_v22  ;;  %v282_v50 = vmul.f32 1.442695, %v229_v9 }
  0x55   :  { %1063 = vpow2.f32 %v260_v44  ;;  %v284_v51 = vmul.f32 1.442695, %v230_v29  ;;  %v286_v57 = vmul.f32 1.442695, %v231_v39  ;;  %v288_v62 = vmul.f32 1.442695, %v232_v63 }
  0x56   :  { %1065 = vpow2.f32 %v262_v31  ;;  %v290_v46 = vmul.f32 1.442695, %v233_v30  ;;  %v1542_v52 = vmul.f32 1.442695, %v234_v10  ;;  %v1544_v45 = vmul.f32 1.442695, %v235_v26 }
  0x57   :  { %v1048_v61 = vpop.eup %1047  ;;  %1067 = vpow2.f32 %v264_v7  ;;  %v1546_v59 = vmul.f32 1.442695, %v236_v21  ;;  %v1548_v43 = vmul.f32 1.442695, %v237_v53  ;;  %v1550_v17 = vmul.f32 1.442695, %v238_v27 }
  0x58   :  { %v1050_v28 = vpop.eup %1049  ;;  %1069 = vpow2.f32 %v266_v36  ;;  %v1552_v48 = vmul.f32 1.442695, %v239_v54  ;;  %v1558_v24 = vadd.f32 1.0, %v1044_v1  ;;  %v1562_v30 = vadd.f32 1.0, %v1046_v60  ;;  %v2590_v22 = vld [vmem:[#allocation12_spill] sm:$0xff] }
  0x59   :  { %v1052_v41 = vpop.eup %1051  ;;  %1071 = vpow2.f32 %v268_v23  ;;  %v1566_v21 = vadd.f32 1.0, %v1048_v61  ;;  %v1570_v44 = vadd.f32 1.0, %v1050_v28  ;;  %v2577_v61 = vld [vmem:[#allocation27_spill] sm:$0xff]  ;;  %v2578_v28 = vld [vmem:[#allocation28_spill] sm:$0xff] }
  0x5a   :  { %v1054_v47 = vpop.eup %1053  ;;  %1073 = vpow2.f32 %v270_v18  ;;  %v1574_v36 = vadd.f32 1.0, %v1052_v41  ;;  %v2579_v18 = vld [vmem:[#allocation33_spill] sm:$0xff] }
  0x5b   :  { %v1056_v29 = vpop.eup %1055  ;;  %1075 = vpow2.f32 %v272_v56  ;;  %v2583_v41 = vld [vmem:[#allocation41_spill] sm:$0xff] }
  0x5c   :  { %v1058_v25 = vpop.eup %1057  ;;  %1077 = vpow2.f32 %v274_v12  ;;  %v1578_v12 = vadd.f32 1.0, %v1054_v47  ;;  %v1582_v60 = vadd.f32 1.0, %v1056_v29  ;;  %v2580_v47 = vld [vmem:[#allocation34_spill] sm:$0xff]  ;;  %v2582_v29 = vld [vmem:[#allocation40_spill] sm:$0xff] }
  0x5d   :  { %v1060_v26 = vpop.eup %1059  ;;  %1079 = vpow2.f32 %v276_v55  ;;  %v1586_v23 = vadd.f32 1.0, %v1058_v25  ;;  %v2581_v55 = vld [vmem:[#allocation35_spill] sm:$0xff]  ;;  %v2584_v25 = vld [vmem:[#allocation42_spill] sm:$0xff] }
  0x5e   :  { %v1062_v27 = vpop.eup %1061  ;;  %1081 = vpow2.f32 %v278_v0  ;;  %v1590_v1 = vadd.f32 1.0, %v1060_v26 }
  0x5f   :  { %v1064_v7 = vpop.eup %1063  ;;  %1083 = vpow2.f32 %v280_v58  ;;  %v1594_v58 = vadd.f32 1.0, %v1062_v27 }
  0x60   :  { %v1066_v56 = vpop.eup %1065  ;;  %1085 = vpow2.f32 %v282_v50  ;;  %v1599_v54 = vadd.f32 1.0, %v1064_v7  ;;  %v2586_v50 = vld [vmem:[#allocation46_spill] sm:$0xff] }
  0x61   :  { %v1068_v0 = vpop.eup %1067  ;;  %1087 = vpow2.f32 %v284_v51  ;;  %v1604_v33 = vadd.f32 1.0, %v1066_v56 }
  0x62   :  { %v1070_v31 = vpop.eup %1069  ;;  %1089 = vpow2.f32 %v286_v57  ;;  %v1609_v10 = vadd.f32 1.0, %v1068_v0 }
  0x63   :  { %v1072_v53 = vpop.eup %1071  ;;  %1091 = vpow2.f32 %v288_v62  ;;  %v2585_v62 = vld [vmem:[#allocation45_spill] sm:$0xff]  ;;  %v1614_v39 = vadd.f32 1.0, %v1070_v31 }
  0x64   :  { %v1074_v49 = vpop.eup %1073  ;;  %1093 = vpow2.f32 %v290_v46  ;;  %v2587_v46 = vld [vmem:[#allocation47_spill] sm:$0xff]  ;;  %v1619_v57 = vadd.f32 1.0, %v1072_v53 }
  0x65   :  { %v1076_v63 = vpop.eup %1075  ;;  %1095 = vpow2.f32 %v1542_v52  ;;  %v2589_v52 = vld [vmem:[#allocation50_spill] sm:$0xff]  ;;  %v1624_v26 = vadd.f32 1.0, %v1074_v49 }
  0x66   :  { %v1078_v51 = vpop.eup %1077  ;;  %1097 = vpow2.f32 %v1544_v45  ;;  %v2591_v45 = vld [vmem:[#allocation13_spill] sm:$0xff]  ;;  %v1628_v27 = vadd.f32 1.0, %v1076_v63 }
  0x67   :  { %v1080_v20 = vpop.eup %1079  ;;  %1099 = vpow2.f32 %v1546_v59  ;;  %v1633_v0 = vadd.f32 1.0, %v1078_v51 }
  0x68   :  { %v1082_v19 = vpop.eup %1081  ;;  %1101 = vpow2.f32 %v1548_v43  ;;  %v1638_v31 = vadd.f32 1.0, %v1080_v20 }
  0x69   :  { %v1084_v11 = vpop.eup %1083  ;;  %1103 = vpow2.f32 %v1550_v17  ;;  %v1643_v53 = vadd.f32 1.0, %v1082_v19 }
  0x6a   :  { %v1086_v7 = vpop.eup %1085  ;;  %1105 = vpow2.f32 %v1552_v48  ;;  %v1648_v49 = vadd.f32 1.0, %v1084_v11 }
  0x6b   :  { %v1088_v56 = vpop.eup %1087  ;;  %1107 = vlog2.f32 %v1558_v24  ;;  %v1653_v63 = vadd.f32 1.0, %v1086_v7 }
  0x6c   :  { %v1090_v59 = vpop.eup %1089  ;;  %1109 = vlog2.f32 %v1562_v30  ;;  %v1658_v51 = vadd.f32 1.0, %v1088_v56 }
  0x6d   :  { %v1092_v43 = vpop.eup %1091  ;;  %1111 = vlog2.f32 %v1566_v21  ;;  %v1663_v21 = vadd.f32 1.0, %v1090_v59 }
  0x6e   :  { %v1094_v17 = vpop.eup %1093  ;;  %1113 = vlog2.f32 %v1570_v44  ;;  %v1668_v44 = vadd.f32 1.0, %v1092_v43 }
  0x6f   :  { %v1096_v48 = vpop.eup %1095  ;;  %1115 = vlog2.f32 %v1574_v36  ;;  %v1673_v36 = vadd.f32 1.0, %v1094_v17 }
  0x70   :  { %v1098_v24 = vpop.eup %1097  ;;  %1117 = vlog2.f32 %v1578_v12  ;;  %v1678_v7 = vadd.f32 1.0, %v1096_v48  ;;  %v2592_v48 = vsub.f32 0.0, %v2590_v22 }
  0x71   :  { %v1100_v30 = vpop.eup %1099  ;;  %1119 = vlog2.f32 %v1582_v60  ;;  %v1683_v56 = vadd.f32 1.0, %v1098_v24 }
  0x72   :  { %v1102_v20 = vpop.eup %1101  ;;  %1121 = vlog2.f32 %v1586_v23  ;;  %v1688_v59 = vadd.f32 1.0, %v1100_v30  ;;  %v2596_v30 = vsub.f32 0.0, %v1324_v2 }
  0x73   :  { %v1104_v19 = vpop.eup %1103  ;;  %1123 = vlog2.f32 %v1590_v1  ;;  %v1694_v1 = vmin.f32 %v2592_v48, 0.0  ;;  %v1696_v24 = vadd.f32 1.0, %v1102_v20  ;;  %v2598_v48 = vsub.f32 0.0, %v1326_v3 }
  0x74   :  { %v1106_v11 = vpop.eup %1105  ;;  %1125 = vlog2.f32 %v1594_v58  ;;  %v1705_v17 = vmin.f32 %v2596_v30, 0.0  ;;  %v1707_v9 = vadd.f32 1.0, %v1104_v19  ;;  %v2600_v20 = vsub.f32 0.0, %v1328_v4 }
  0x75   :  { %v1108_v12 = vpop.eup %1107  ;;  %1127 = vlog2.f32 %v1599_v54  ;;  %2593 = vst [vmem:[#allocation27_spill] sm:$0xff] %v1694_v1  ;;  %v1712_v54 = vmin.f32 %v2598_v48, 0.0  ;;  %v2602_v30 = vsub.f32 0.0, %v1330_v5  ;;  %v2604_v19 = vsub.f32 0.0, %v1332_v6 }
  0x76   :  { %v1110_v60 = vpop.eup %1109  ;;  %1129 = vlog2.f32 %v1604_v33  ;;  %v2594_v33 = vsub.f32 0.0, %v2591_v45  ;;  %2597 = vst [vmem:[#allocation33_spill] sm:$0xff] %v1705_v17  ;;  %v1729_v48 = vadd.f32 1.0, %v1106_v11  ;;  %v2610_v11 = vsub.f32 0.0, %v1345_v16 }
  0x77   :  { %v1112_v23 = vpop.eup %1111  ;;  %1131 = vlog2.f32 %v1609_v10  ;;  %2599 = vst [vmem:[#allocation34_spill] sm:$0xff] %v1712_v54  ;;  %v1723_v17 = vmin.f32 %v2602_v30, 0.0  ;;  %v1731_v54 = vmul.f32 0.6931472, %v1110_v60  ;;  %v2609_v30 = vsub.f32 0.0, %v1343_v15 }
  0x78   :  { %v1114_v43 = vpop.eup %1113  ;;  %1133 = vlog2.f32 %v1614_v39  ;;  %v1701_v58 = vmin.f32 %v2594_v33, 0.0  ;;  %v1716_v39 = vmin.f32 %v2600_v20, 0.0  ;;  %v1718_v33 = vmul.f32 0.6931472, %v1108_v12 }
  0x79   :  { %v1116_v10 = vpop.eup %1115  ;;  %1135 = vlog2.f32 %v1619_v57  ;;  %2603 = vst [vmem:[#allocation40_spill] sm:$0xff] %v1723_v17  ;;  %v1727_v57 = vmin.f32 %v2604_v19, 0.0  ;;  %2606 = vst [vmem:[#allocation42_spill] sm:$0xff] %v1731_v54  ;;  %v2607_v12 = vsub.f32 0.0, %v1335_v8  ;;  %v1743_v19 = vmin.f32 %v2609_v30, 0.0 }
  0x7a   :  { %2595 = vst [vmem:[#allocation28_spill] sm:$0xff] %v1701_v58  ;;  %2601 = vst [vmem:[#allocation35_spill] sm:$0xff] %v1716_v39  ;;  %v1118_v1 = vpop.eup %1117  ;;  %1137 = vlog2.f32 %v1624_v26  ;;  %v1738_v39 = vmul.f32 0.6931472, %v1112_v23  ;;  %v1749_v17 = vmul.f32 0.6931472, %v1114_v43 }
  0x7b   :  { %2605 = vst [vmem:[#allocation41_spill] sm:$0xff] %v1727_v57  ;;  %v1120_v58 = vpop.eup %1119  ;;  %1139 = vlog2.f32 %v1628_v27  ;;  %v1736_v20 = vmin.f32 %v2607_v12, 0.0  ;;  %v1747_v57 = vmin.f32 %v2610_v11, 0.0  ;;  %v2613_v27 = vsub.f32 0.0, %v1397_v13 }
  0x7c   :  { %v1122_v26 = vpop.eup %1121  ;;  %1141 = vlog2.f32 %v1633_v0  ;;  %2612 = vst [vmem:[#allocation47_spill] sm:$0xff] %v1749_v17  ;;  %v2615_v23 = vsub.f32 0.0, %v1399_v14  ;;  %v1760_v30 = vmul.f32 0.6931472, %v1116_v10  ;;  %v2617_v11 = vmin.f32 %v2590_v22, 0.0 }
  0x7d   :  { %2608 = vst [vmem:[#allocation45_spill] sm:$0xff] %v1736_v20  ;;  %2611 = vst [vmem:[#allocation46_spill] sm:$0xff] %v1747_v57  ;;  %v1124_v60 = vpop.eup %1123  ;;  %1143 = vlog2.f32 %v1638_v31  ;;  %v1754_v12 = vmin.f32 %v2613_v27, 0.0  ;;  %v2619_v31 = vsub.f32 0.0, %v1409_v32  ;;  %v2621_v10 = vmin.f32 %v2591_v45, 0.0 }
  0x7e   :  { %v1758_v0 = vmin.f32 %v2615_v23, 0.0  ;;  %v1126_v20 = vpop.eup %1125  ;;  %1145 = vlog2.f32 %v1643_v53  ;;  %v1766_v43 = vsub.f32 %v2617_v11, %v1718_v33  ;;  %v2623_v53 = vsub.f32 0.0, %v1411_v37 }
  0x7f   :  { %2614 = vst [vmem:[#allocation12_spill] sm:$0xff] %v1754_v12  ;;  %v1770_v57 = vmin.f32 %v2619_v31, 0.0  ;;  %v1128_v27 = vpop.eup %1127  ;;  %v1772_v12 = vmul.f32 0.6931472, %v1118_v1  ;;  %1147 = vlog2.f32 %v1648_v49  ;;  %v1778_v23 = vsub.f32 %v2621_v10, %v1731_v54 }
  0x80   :  { %2616 = vst [vmem:[#allocation13_spill] sm:$0xff] %v1758_v0  ;;  %2618 = vst [vmem:[#allocation57_spill] sm:$0xff] %v1766_v43  ;;  %v1782_v0 = vmin.f32 %v2623_v53, 0.0  ;;  %v1130_v22 = vpop.eup %1129  ;;  %v1784_v11 = vmul.f32 0.6931472, %v1120_v58  ;;  %1149 = vlog2.f32 %v1653_v63  ;;  %v2624_v1 = vmin.f32 %v1324_v2, 0.0 }
  0x81   :  { %2620 = vst [vmem:[#allocation58_spill] sm:$0xff] %v1772_v12  ;;  %2622 = vst [vmem:[#allocation59_spill] sm:$0xff] %v1778_v23  ;;  %v2626_v49 = vsub.f32 0.0, %v1413_v42  ;;  %v1132_v45 = vpop.eup %1131  ;;  %v1796_v10 = vmul.f32 0.6931472, %v1122_v26  ;;  %1151 = vlog2.f32 %v1658_v51  ;;  %v2629_v58 = vmin.f32 %v1326_v3, 0.0 }
  0x82   :  { %v1790_v31 = vsub.f32 %v2624_v1, %v1738_v39  ;;  %v2631_v63 = vsub.f32 0.0, %v1423_v34  ;;  %v1134_v2 = vpop.eup %1133  ;;  %v1808_v1 = vmul.f32 0.6931472, %v1124_v60  ;;  %1153 = vlog2.f32 %v1663_v21 }
  0x83   :  { %v1794_v43 = vmin.f32 %v2626_v49, 0.0  ;;  %2628 = vst [vmem:[#allocation62_spill] sm:$0xff] %v1796_v10  ;;  %v1802_v53 = vsub.f32 %v2629_v58, %v1749_v17  ;;  %v2634_v26 = vmin.f32 %v1328_v4, 0.0  ;;  %v2636_v51 = vsub.f32 0.0, %v1425_v35  ;;  %v1136_v3 = vpop.eup %1135 }
  0x84   :  { %2625 = vst [vmem:[#allocation60_spill] sm:$0xff] %v1790_v31  ;;  %v1806_v23 = vmin.f32 %v2631_v63, 0.0  ;;  %2633 = vst [vmem:[#allocation65_spill] sm:$0xff] %v1808_v1  ;;  %v1820_v58 = vmul.f32 0.6931472, %v1126_v20  ;;  %1155 = vlog2.f32 %v1668_v44  ;;  %v2638_v60 = vmin.f32 %v1330_v5, 0.0  ;;  %v1138_v4 = vpop.eup %1137 }
  0x85   :  { %2627 = vst [vmem:[#allocation61_spill] sm:$0xff] %v1794_v43  ;;  %2630 = vst [vmem:[#allocation63_spill] sm:$0xff] %v1802_v53  ;;  %v1814_v49 = vsub.f32 %v2634_v26, %v1760_v30  ;;  %v1818_v31 = vmin.f32 %v2636_v51, 0.0  ;;  %v2640_v21 = vsub.f32 0.0, %v1427_v38  ;;  %v1832_v26 = vmul.f32 0.6931472, %v1128_v27  ;;  %v1140_v5 = vpop.eup %1139 }
  0x86   :  { %2632 = vst [vmem:[#allocation64_spill] sm:$0xff] %v1806_v23  ;;  %v1826_v63 = vsub.f32 %v2638_v60, %v1772_v12  ;;  %1157 = vlog2.f32 %v1673_v36  ;;  %v2642_v20 = vmin.f32 %v1332_v6, 0.0  ;;  %v2644_v44 = vsub.f32 0.0, %v1437_v40  ;;  %v1142_v6 = vpop.eup %1141 }
  0x87   :  { %2635 = vst [vmem:[#allocation66_spill] sm:$0xff] %v1814_v49  ;;  %2637 = vst [vmem:[#allocation67_spill] sm:$0xff] %v1818_v31  ;;  %v1830_v53 = vmin.f32 %v2640_v21, 0.0  ;;  %v1844_v60 = vmul.f32 0.6931472, %v1130_v22  ;;  %1159 = vlog2.f32 %v1678_v7  ;;  %v2646_v27 = vmin.f32 %v1335_v8, 0.0 }
  0x88   :  { %2639 = vst [vmem:[#allocation68_spill] sm:$0xff] %v1826_v63  ;;  %v1838_v51 = vsub.f32 %v2642_v20, %v1784_v11  ;;  %v1842_v49 = vmin.f32 %v2644_v44, 0.0  ;;  %v2648_v36 = vsub.f32 0.0, %v2577_v61  ;;  %1161 = vlog2.f32 %v1683_v56  ;;  %v1176_v31 = vld [vmem:[#allocation3 + $0x28] sm:$0xff] }
  0x89   :  { %2641 = vst [vmem:[#allocation69_spill] sm:$0xff] %v1830_v53  ;;  %v1850_v21 = vsub.f32 %v2646_v27, %v1796_v10  ;;  %v2650_v20 = vmin.f32 %v1343_v15, 0.0  ;;  %v2652_v22 = vsub.f32 0.0, %v2578_v28  ;;  %v2654_v8 = vsub.f32 0.0, %v2579_v18 }
  0x8a   :  { %2643 = vst [vmem:[#allocation70_spill] sm:$0xff] %v1838_v51  ;;  %2645 = vst [vmem:[#allocation71_spill] sm:$0xff] %v1842_v49  ;;  %v1854_v63 = vmin.f32 %v2648_v36, 0.0  ;;  %v1870_v51 = vmul.f32 0.6931472, %v1132_v45  ;;  %1163 = vlog2.f32 %v1688_v59  ;;  %v2656_v15 = vmin.f32 %v1345_v16, 0.0 }
  0x8b   :  { %2647 = vst [vmem:[#allocation72_spill] sm:$0xff] %v1850_v21  ;;  %v1860_v44 = vsub.f32 %v2650_v20, %v1808_v1  ;;  %v1864_v7 = vmin.f32 %v2652_v22, 0.0  ;;  %v1868_v27 = vmin.f32 %v2654_v8, 0.0  ;;  %v1144_v21 = vpop.eup %1143  ;;  %v1872_v36 = vmul.f32 0.6931472, %v1134_v2  ;;  %v2791_v49 = vld [vmem:[#allocation45_spill] sm:$0xff] }
  0x8c   :  { %2649 = vst [vmem:[#allocation73_spill] sm:$0xff] %v1854_v63  ;;  %v1878_v56 = vsub.f32 %v2656_v15, %v1820_v58  ;;  %v1146_v20 = vpop.eup %1145  ;;  %1165 = vlog2.f32 %v1696_v24  ;;  %v2659_v22 = vmin.f32 %v1397_v13, 0.0  ;;  %v2661_v45 = vsub.f32 0.0, %v2580_v47 }
  0x8d   :  { %2651 = vst [vmem:[#allocation74_spill] sm:$0xff] %v1860_v44  ;;  %2653 = vst [vmem:[#allocation75_spill] sm:$0xff] %v1864_v7  ;;  %v1880_v44 = vmul.f32 0.6931472, %v1136_v3  ;;  %v1148_v59 = vpop.eup %1147  ;;  %1167 = vlog2.f32 %v1707_v9  ;;  %v2664_v16 = vmin.f32 %v1399_v14, 0.0  ;;  %v2666_v24 = vsub.f32 0.0, %v2581_v55 }
  0x8e   :  { %2655 = vst [vmem:[#allocation76_spill] sm:$0xff] %v1868_v27  ;;  %2657 = vst [vmem:[#allocation77_spill] sm:$0xff] %v1878_v56  ;;  %v1886_v8 = vsub.f32 %v2659_v22, %v1832_v26  ;;  %v1890_v2 = vmin.f32 %v2661_v45, 0.0  ;;  %v1892_v27 = vmul.f32 0.6931472, %v1138_v4  ;;  %v1150_v13 = vpop.eup %1149  ;;  %1169 = vlog2.f32 %v1729_v48 }
  0x8f   :  { %2658 = vst [vmem:[#allocation78_spill] sm:$0xff] %v1880_v44  ;;  %v1898_v3 = vsub.f32 %v2664_v16, %v1844_v60  ;;  %v1902_v15 = vmin.f32 %v2666_v24, 0.0  ;;  %v1904_v22 = vmul.f32 0.6931472, %v1140_v5  ;;  %v2670_v4 = vsub.f32 0.0, %v2582_v29  ;;  %v1152_v9 = vpop.eup %1151 }
  0x90   :  { %2660 = vst [vmem:[#allocation79_spill] sm:$0xff] %v1886_v8  ;;  %2662 = vst [vmem:[#allocation80_spill] sm:$0xff] %v1890_v2  ;;  %v1906_v8 = vmul.f32 0.6931472, %v1142_v6  ;;  %v1913_v56 = vmul.f32 0.6931472, %v1144_v21 }
  0x91   :  { %2663 = vst [vmem:[#allocation81_spill] sm:$0xff] %v1892_v27  ;;  %2665 = vst [vmem:[#allocation82_spill] sm:$0xff] %v1898_v3  ;;  %v1911_v45 = vmin.f32 %v2670_v4, 0.0  ;;  %v2673_v14 = vmin.f32 %v1409_v32, 0.0  ;;  %v2675_v5 = vmin.f32 %v1411_v37, 0.0  ;;  %v2677_v6 = vsub.f32 0.0, %v2583_v41  ;;  %v1154_v3 = vpop.eup %1153 }
  0x92   :  { %2667 = vst [vmem:[#allocation83_spill] sm:$0xff] %v1902_v15  ;;  %2668 = vst [vmem:[#allocation84_spill] sm:$0xff] %v1904_v22  ;;  %v1929_v4 = vmul.f32 0.6931472, %v1146_v20  ;;  %v2681_v21 = vmin.f32 %v1413_v42, 0.0  ;;  %v1156_v37 = vpop.eup %1155  ;;  %v2688_v20 = vsub.f32 0.0, %v2585_v62 }
  0x93   :  { %2669 = vst [vmem:[#allocation85_spill] sm:$0xff] %v1906_v8  ;;  %2671 = vst [vmem:[#allocation86_spill] sm:$0xff] %v1911_v45  ;;  %v1918_v16 = vsub.f32 %v2673_v14, %v1870_v51  ;;  %v1923_v24 = vsub.f32 %v2675_v5, %v1872_v36  ;;  %v1927_v48 = vmin.f32 %v2677_v6, 0.0  ;;  %v1931_v45 = vmul.f32 0.6931472, %v1148_v59  ;;  %v2757_v15 = vld [vmem:[#allocation66_spill] sm:$0xff] }
  0x94   :  { %2672 = vst [vmem:[#allocation87_spill] sm:$0xff] %v1913_v56  ;;  %2679 = vst [vmem:[#allocation91_spill] sm:$0xff] %v1929_v4  ;;  %v1936_v32 = vsub.f32 %v2681_v21, %v1880_v44  ;;  %v2683_v14 = vsub.f32 0.0, %v2584_v25  ;;  %v1942_v5 = vmul.f32 0.6931472, %v1150_v13  ;;  %v2686_v6 = vmin.f32 %v1423_v34, 0.0 }
  0x95   :  { %2674 = vst [vmem:[#allocation88_spill] sm:$0xff] %v1918_v16  ;;  %2676 = vst [vmem:[#allocation89_spill] sm:$0xff] %v1923_v24  ;;  %v1951_v59 = vmin.f32 %v2688_v20, 0.0  ;;  %v2690_v42 = vsub.f32 0.0, %v2586_v50  ;;  %v2693_v13 = vmin.f32 %v1425_v35, 0.0  ;;  %v2695_v34 = vmin.f32 %v1427_v38, 0.0 }
  0x96   :  { %2678 = vst [vmem:[#allocation90_spill] sm:$0xff] %v1927_v48  ;;  %2680 = vst [vmem:[#allocation92_spill] sm:$0xff] %v1931_v45  ;;  %v1940_v16 = vmin.f32 %v2683_v14, 0.0  ;;  %v1947_v24 = vsub.f32 %v2686_v6, %v1892_v27  ;;  %v1957_v48 = vmul.f32 0.6931472, %v1152_v9  ;;  %v2697_v20 = vsub.f32 0.0, %v2587_v46 }
  0x97   :  { %2682 = vst [vmem:[#allocation93_spill] sm:$0xff] %v1936_v32  ;;  %2685 = vst [vmem:[#allocation95_spill] sm:$0xff] %v1942_v5  ;;  %v1955_v21 = vmin.f32 %v2690_v42, 0.0  ;;  %v1158_v32 = vpop.eup %1157  ;;  %v1962_v14 = vsub.f32 %v2693_v13, %v1904_v22  ;;  %v1967_v6 = vsub.f32 %v2695_v34, %v1906_v8  ;;  %v1973_v42 = vmul.f32 0.6931472, %v1154_v3  ;;  %v2702_v35 = vld [vmem:[#allocation49_spill] sm:$0xff] }
  0x98   :  { %2684 = vst [vmem:[#allocation94_spill] sm:$0xff] %v1940_v16  ;;  %2687 = vst [vmem:[#allocation96_spill] sm:$0xff] %v1947_v24  ;;  %v1971_v24 = vmin.f32 %v2697_v20, 0.0  ;;  %v2700_v9 = vmin.f32 %v1437_v40, 0.0  ;;  %v2703_v13 = vsub.f32 0.0, %v2702_v35  ;;  %v2705_v38 = vsub.f32 0.0, %v2589_v52 }
  0x99   :  { %2689 = vst [vmem:[#allocation97_spill] sm:$0xff] %v1951_v59  ;;  %2691 = vst [vmem:[#allocation98_spill] sm:$0xff] %v1955_v21  ;;  %v1160_v59 = vpop.eup %1159  ;;  %v2707_v20 = vmin.f32 %v2577_v61, 0.0  ;;  %v2709_v3 = vmin.f32 %v2578_v28, 0.0  ;;  %v2013_v52 = vmul.f32 0.6931472, %v1158_v32 }
  0x9a   :  { %2692 = vst [vmem:[#allocation99_spill] sm:$0xff] %v1957_v48  ;;  %2694 = vst [vmem:[#allocation100_spill] sm:$0xff] %v1962_v14  ;;  %v1978_v21 = vsub.f32 %v2700_v9, %v1913_v56  ;;  %v1982_v14 = vmin.f32 %v2703_v13, 0.0  ;;  %v1986_v34 = vmin.f32 %v2705_v38, 0.0  ;;  %v2711_v9 = vld [vmem:[#allocation27_spill] sm:$0xff]  ;;  %v2725_v32 = vld [vmem:[#allocation41_spill] sm:$0xff] }
  0x9b   :  { %2696 = vst [vmem:[#allocation101_spill] sm:$0xff] %v1967_v6  ;;  %2698 = vst [vmem:[#allocation102_spill] sm:$0xff] %v1971_v24  ;;  %v1162_v6 = vpop.eup %1161  ;;  %v1991_v24 = vsub.f32 %v2707_v20, %v1929_v4  ;;  %v1996_v40 = vsub.f32 %v2709_v3, %v1931_v45  ;;  %v2002_v38 = vmul.f32 0.6931472, %v1156_v37  ;;  %v2716_v20 = vld [vmem:[#allocation33_spill] sm:$0xff]  ;;  %v2721_v37 = vld [vmem:[#allocation35_spill] sm:$0xff] }
  0x9c   :  { %2699 = vst [vmem:[#allocation103_spill] sm:$0xff] %v1973_v42  ;;  %2701 = vst [vmem:[#allocation104_spill] sm:$0xff] %v1978_v21  ;;  %v1164_v16 = vpop.eup %1163  ;;  %v2024_v13 = vmul.f32 0.6931472, %v1160_v59  ;;  %v2724_v3 = vmin.f32 %v2581_v55, 0.0  ;;  %v2735_v59 = vmin.f32 %v2583_v41, 0.0 }
  0x9d   :  { %2704 = vst [vmem:[#allocation49_spill] sm:$0xff] %v1982_v14  ;;  %2706 = vst [vmem:[#allocation105_spill] sm:$0xff] %v1986_v34  ;;  %v2714_v34 = vmin.f32 %v2579_v18, 0.0  ;;  %v2719_v14 = vmin.f32 %v2580_v47, 0.0  ;;  %v2722_v18 = vld [vmem:[#allocation40_spill] sm:$0xff]  ;;  %v2737_v10 = vmin.f32 %v2584_v25, 0.0 }
  0x9e   :  { %2708 = vst [vmem:[#allocation106_spill] sm:$0xff] %v1991_v24  ;;  %2710 = vst [vmem:[#allocation107_spill] sm:$0xff] %v1996_v40  ;;  %v1166_v40 = vpop.eup %1165  ;;  %v2029_v24 = vsub.f32 %v2724_v3, %v1973_v42  ;;  %v2035_v28 = vmul.f32 0.6931472, %v1162_v6  ;;  %v2037_v54 = vmul.f32 0.6931472, %v1164_v16  ;;  %v2059_v1 = vsub.f32 %v2735_v59, %v2013_v52 }
  0x9f   :  { %2713 = vst [vmem:[#allocation27_spill] sm:$0xff] %v2002_v38  ;;  %v2007_v61 = vsub.f32 %v2714_v34, %v1942_v5  ;;  %2718 = vst [vmem:[#allocation33_spill] sm:$0xff] %v2013_v52  ;;  %v2018_v21 = vsub.f32 %v2719_v14, %v1957_v48  ;;  %v2729_v34 = vld [vmem:[#allocation46_spill] sm:$0xff]  ;;  %v2043_v55 = vmul.f32 0.6931472, %v1166_v40  ;;  %v2731_v3 = vmin.f32 %v2582_v29, 0.0 }
  0xa0   :  { %2723 = vst [vmem:[#allocation35_spill] sm:$0xff] %v2024_v13  ;;  %2727 = vst [vmem:[#allocation40_spill] sm:$0xff] %v2035_v28  ;;  %v2732_v14 = vld [vmem:[#allocation12_spill] sm:$0xff]  ;;  %v2733_v6 = vld [vmem:[#allocation13_spill] sm:$0xff]  ;;  %v2070_v12 = vsub.f32 %v2737_v10, %v2024_v13  ;;  %v2738_v59 = vmin.f32 %v2585_v62, 0.0 }
  0xa1   :  { %2715 = vst [vmem:[#allocation108_spill] sm:$0xff] %v2007_v61  ;;  %2720 = vst [vmem:[#allocation109_spill] sm:$0xff] %v2018_v21  ;;  %v1168_v61 = vpop.eup %1167  ;;  %v2048_v17 = vsub.f32 %v2731_v3, %v2002_v38  ;;  %v2743_v62 = vld [vmem:[#allocation50_spill] sm:$0xff]  ;;  %v2755_v48 = vld [vmem:[#allocation60_spill] sm:$0xff]  ;;  %vm565_vm5 = vcmp.le.f32.partialorder %v1176_v31, -88.72284 }
  0xa2   :  { %v1170_v21 = vpop.eup %1169  ;;  %2728 = vst [vmem:[#allocation41_spill] sm:$0xff] %v2037_v54  ;;  %2730 = vst [vmem:[#allocation46_spill] sm:$0xff] %v2043_v55  ;;  %v2054_v47 = vmul.f32 0.6931472, %v1168_v61  ;;  %v2079_v40 = vsub.f32 %v2738_v59, %v2035_v28  ;;  %v2740_v61 = vmin.f32 %v2587_v46, 0.0  ;;  %v2744_v59 = vmin.f32 %v2743_v62, 0.0 }
  0xa3   :  { %v2065_v3 = vmul.f32 0.6931472, %v1170_v21  ;;  %v2739_v21 = vmin.f32 %v2586_v50, 0.0  ;;  %v1171_v50 = vld [vmem:[#allocation3] sm:$0xff]  ;;  %v1173_v16 = vld [vmem:[#allocation3 + $0x10] sm:$0xff]  ;;  %v1174_v13 = vld [vmem:[#allocation3 + $0x18] sm:$0xff] }
  0xa4   :  { %2734 = vst [vmem:[#allocation12_spill] sm:$0xff] %v2054_v47  ;;  %v2093_v41 = vsub.f32 %v2740_v61, %v2043_v55  ;;  %vm560_vm0 = vcmp.le.f32.partialorder %v1171_v50, -88.72284  ;;  %vm562_vm2 = vcmp.le.f32.partialorder %v1173_v16, -88.72284  ;;  %v2753_v46 = vld [vmem:[#allocation57_spill] sm:$0xff] }
  0xa5   :  { %2736 = vst [vmem:[#allocation13_spill] sm:$0xff] %v2065_v3  ;;  %v2084_v29 = vsub.f32 %v2739_v21, %v2037_v54  ;;  %v2741_v21 = vmin.f32 %v2702_v35, 0.0  ;;  %v2115_v4 = vsub.f32 %v2744_v59, %v2065_v3  ;;  %vm563_vm3 = vcmp.le.f32.partialorder %v1174_v13, -88.72284  ;;  %v2754_v61 = vld [vmem:[#allocation59_spill] sm:$0xff]  ;;  %v2758_v59 = vld [vmem:[#allocation68_spill] sm:$0xff] }
  0xa6   :  { %v592_v28 = vmax.f32 %v2753_v46, -100.0  ;;  %v593_v54 = vmax.f32 %v2754_v61, -100.0  ;;  %v594_v62 = vmax.f32 %v2755_v48, -100.0  ;;  %v2756_v55 = vld [vmem:[#allocation63_spill] sm:$0xff]  ;;  %v2759_v3 = vld [vmem:[#allocation70_spill] sm:$0xff]  ;;  %v2760_v7 = vld [vmem:[#allocation72_spill] sm:$0xff] }
  0xa7   :  { %v2104_v25 = vsub.f32 %v2741_v21, %v2054_v47  ;;  %v1172_v21 = vld [vmem:[#allocation3 + $0x8] sm:$0xff]  ;;  %v595_v42 = vmax.f32 %v2756_v55, -100.0  ;;  %v596_v47 = vmax.f32 %v2757_v15, -100.0  ;;  %v1175_v5 = vld [vmem:[#allocation3 + $0x20] sm:$0xff]  ;;  %v2761_v35 = vld [vmem:[#allocation74_spill] sm:$0xff]  ;;  %v2766_v15 = vsub.f32 %v2711_v9, %v1718_v33 }
  0xa8   :  { %vm561_vm1 = vcmp.le.f32.partialorder %v1172_v21, -88.72284  ;;  %vm564_vm4 = vcmp.le.f32.partialorder %v1175_v5, -88.72284  ;;  %v2762_v10 = vld [vmem:[#allocation77_spill] sm:$0xff]  ;;  %v2763_v63 = vld [vmem:[#allocation79_spill] sm:$0xff]  ;;  %v2775_v33 = vsub.f32 %v2716_v20, %v1738_v39 }
  0xa9   :  { %v2764_v56 = vld [vmem:[#allocation82_spill] sm:$0xff]  ;;  %v688_v38 = vmax.f32 %v2766_v15, -100.0  ;;  %v2767_v8 = vld [vmem:[#allocation28_spill] sm:$0xff]  ;;  %vm656_vm6 = vcmp.ge.f32.partialorder %v1171_v50, 16.635532  ;;  %v624_v46 = vsel %vm560_vm0, -100.0, %v592_v28 }
  0xaa   :  { %v2768_v45 = vld [vmem:[#allocation42_spill] sm:$0xff]  ;;  %vm657_vm7 = vcmp.ge.f32.partialorder %v1172_v21, 16.635532  ;;  %v690_v9 = vmax.f32 %v2775_v33, -100.0  ;;  %vm658_vm9 = vcmp.ge.f32.partialorder %v1173_v16, 16.635532 }
  0xab   :  { %v2769_v53 = vsub.f32 %v2767_v8, %v2768_v45  ;;  %v1177_v8 = vld [vmem:[#allocation3 + $0x30] sm:$0xff]  ;;  %v625_v27 = vsel %vm561_vm1, -100.0, %v593_v54  ;;  %v2779_v61 = vld [vmem:[#allocation47_spill] sm:$0xff]  ;;  %v720_v43 = vsel %vm656_vm6, -100.0, %v688_v38  ;;  %v2782_v33 = vld [vmem:[#allocation108_spill] sm:$0xff]  ;;  %v626_v50 = vsel %vm562_vm2, -100.0, %v594_v62 }
  0xac   :  { %vm566_vm8 = vcmp.le.f32.partialorder %v1177_v8, -88.72284  ;;  %v2777_v15 = vld [vmem:[#allocation106_spill] sm:$0xff]  ;;  %v2781_v39 = vld [vmem:[#allocation107_spill] sm:$0xff]  ;;  %v2783_v45 = vld [vmem:[#allocation109_spill] sm:$0xff]  ;;  %v2784_v54 = vsub.f32 %v2721_v37, %v1760_v30 }
  0xad   :  { %v689_v22 = vmax.f32 %v2769_v53, -100.0  ;;  %v2778_v48 = vld [vmem:[#allocation34_spill] sm:$0xff]  ;;  %vm659_vm11 = vcmp.ge.f32.partialorder %v1174_v13, 16.635532  ;;  %v1179_v38 = vld [vmem:[#allocation3 + $0x40] sm:$0xff]  ;;  %v627_v53 = vsel %vm563_vm3, -100.0, %v595_v42  ;;  %v2787_v42 = vsub.f32 %v2725_v32, %v1784_v11 }
  0xae   :  { %v2780_v55 = vsub.f32 %v2778_v48, %v2779_v61  ;;  %v1178_v52 = vld [vmem:[#allocation3 + $0x38] sm:$0xff]  ;;  %v692_v21 = vmax.f32 %v2784_v54, -100.0  ;;  %v722_v61 = vsel %vm658_vm9, -100.0, %v690_v9  ;;  %vm568_vm12 = vcmp.le.f32.partialorder %v1179_v38, -88.72284  ;;  %v1180_v2 = vld [vmem:[#allocation3 + $0x48] sm:$0xff] }
  0xaf   :  { %v721_v44 = vsel %vm657_vm7, -100.0, %v689_v22  ;;  %vm567_vm10 = vcmp.le.f32.partialorder %v1178_v52, -88.72284  ;;  %vm660_vm13 = vcmp.ge.f32.partialorder %v1175_v5, 16.635532  ;;  %v752_v48 = vsub.f32 %v624_v46, %v720_v43  ;;  %v2785_v28 = vld [vmem:[#allocation58_spill] sm:$0xff] }
  0xb0   :  { %v691_v23 = vmax.f32 %v2780_v55, -100.0  ;;  %v753_v55 = vsub.f32 %v625_v27, %v721_v44  ;;  %v2786_v16 = vsub.f32 %v2722_v18, %v2785_v28  ;;  %vm569_vm14 = vcmp.le.f32.partialorder %v1180_v2, -88.72284  ;;  %v1181_v28 = vld [vmem:[#allocation3 + $0x50] sm:$0xff]  ;;  %v2788_v54 = vld [vmem:[#allocation15_spill] sm:$0xff]  ;;  %v2789_v30 = vld [vmem:[#allocation16_spill] sm:$0xff] }
  0xb1   :  { %vm661_vm15 = vcmp.ge.f32.partialorder %v1176_v31, 16.635532  ;;  %v754_v9 = vsub.f32 %v626_v50, %v722_v61  ;;  %v628_v27 = vsel %vm564_vm4, -100.0, %v596_v47  ;;  %v694_v13 = vmax.f32 %v2787_v42, -100.0  ;;  %v2792_v22 = vld [vmem:[#allocation62_spill] sm:$0xff]  ;;  %v2796_v31 = vld [vmem:[#allocation65_spill] sm:$0xff] }
  0xb2   :  { %v693_v62 = vmax.f32 %v2786_v16, -100.0  ;;  %v723_v20 = vsel %vm659_vm11, -100.0, %v691_v23  ;;  %v724_v18 = vsel %vm660_vm13, -100.0, %v692_v21  ;;  %vm570_vm0 = vcmp.le.f32.partialorder %v1181_v28, -88.72284  ;;  %v1182_v21 = vld [vmem:[#allocation3 + $0x58] sm:$0xff] }
  0xb3   :  { %vm662_vm1 = vcmp.ge.f32.partialorder %v1177_v8, 16.635532  ;;  %v755_v23 = vsub.f32 %v627_v53, %v723_v20  ;;  %v784_v16 = vmul.f32 %v752_v48, %v2788_v54  ;;  %v785_v37 = vmul.f32 %v753_v55, %v2789_v30  ;;  %v2794_v48 = vld [vmem:[#allocation17_spill] sm:$0xff] }
  0xb4   :  { %v2790_v46 = vmax.f32 %v2758_v59, -100.0  ;;  %v2793_v11 = vsub.f32 %v2791_v49, %v2792_v22  ;;  %v725_v5 = vsel %vm661_vm15, -100.0, %v693_v62  ;;  %vm571_vm2 = vcmp.le.f32.partialorder %v1182_v21, -88.72284  ;;  %v1183_v22 = vld [vmem:[#allocation3 + $0x60] sm:$0xff] }
  0xb5   :  { %vm663_vm3 = vcmp.ge.f32.partialorder %v1178_v52, 16.635532  ;;  %v756_v53 = vsub.f32 %v628_v27, %v724_v18  ;;  %v786_v54 = vmul.f32 %v754_v9, %v2794_v48  ;;  %v2795_v55 = vmax.f32 %v2759_v3, -100.0  ;;  %v1185_v52 = vld [vmem:[#allocation3 + $0x70] sm:$0xff] }
  0xb6   :  { %v629_v47 = vsel %vm565_vm5, -100.0, %v2790_v46  ;;  %v695_v32 = vmax.f32 %v2793_v11, -100.0  ;;  %vm664_vm4 = vcmp.ge.f32.partialorder %v1179_v38, 16.635532  ;;  %v2797_v59 = vsub.f32 %v1743_v19, %v2796_v31  ;;  %v2798_v11 = vld [vmem:[#allocation18_spill] sm:$0xff]  ;;  %v2801_v31 = vld [vmem:[#allocation19_spill] sm:$0xff] }
  0xb7   :  { %v630_v30 = vsel %vm566_vm8, -100.0, %v2795_v55  ;;  %v726_v49 = vsel %vm662_vm1, -100.0, %v694_v13  ;;  %vm572_vm5 = vcmp.le.f32.partialorder %v1183_v22, -88.72284  ;;  %v757_v62 = vsub.f32 %v629_v47, %v725_v5  ;;  %v1184_v13 = vld [vmem:[#allocation3 + $0x68] sm:$0xff] }
  0xb8   :  { %v696_v46 = vmax.f32 %v2797_v59, -100.0  ;;  %v787_v42 = vmul.f32 %v755_v23, %v2798_v11  ;;  %v816_v50 = vadd.f32 %v784_v16, %v720_v43  ;;  %v817_v27 = vadd.f32 %v785_v37, %v721_v44 }
  0xb9   :  { %v623_v9 = vmax.f32 %v2115_v4, -100.0  ;;  %v2799_v3 = vmax.f32 %v2760_v7, -100.0  ;;  %v2800_v55 = vsub.f32 %v2729_v34, %v1820_v58  ;;  %v727_v8 = vsel %vm663_vm3, -100.0, %v695_v32  ;;  %v2804_v32 = vld [vmem:[#allocation20_spill] sm:$0xff] }
  0xba   :  { %vm573_vm6 = vcmp.le.f32.partialorder %v1184_v13, -88.72284  ;;  %vm665_vm7 = vcmp.ge.f32.partialorder %v1180_v2, 16.635532  ;;  %v758_v47 = vsub.f32 %v630_v30, %v726_v49  ;;  %v788_v23 = vmul.f32 %v756_v53, %v2801_v31  ;;  %v1187_v2 = vld [vmem:[#allocation3 + $0x80] sm:$0xff] }
  0xbb   :  { %v631_v48 = vsel %vm567_vm10, -100.0, %v2799_v3  ;;  %v697_v19 = vmax.f32 %v2800_v55, -100.0  ;;  %v818_v43 = vadd.f32 %v786_v54, %v722_v61  ;;  %v2802_v44 = vmax.f32 %v2761_v35, -100.0 }
  0xbc   :  { %vm666_vm8 = vcmp.ge.f32.partialorder %v1181_v28, 16.635532  ;;  %v2803_v7 = vsub.f32 %v2732_v14, %v1832_v26  ;;  %v728_v58 = vsel %vm664_vm4, -100.0, %v696_v46  ;;  %vm574_vm9 = vcmp.le.f32.partialorder %v1185_v52, -88.72284  ;;  %v1186_v14 = vld [vmem:[#allocation3 + $0x78] sm:$0xff] }
  0xbd   :  { %v632_v37 = vsel %vm568_vm12, -100.0, %v2802_v44  ;;  %v759_v34 = vsub.f32 %v631_v48, %v727_v8  ;;  %v789_v59 = vmul.f32 %v757_v62, %v2804_v32  ;;  %v819_v30 = vadd.f32 %v787_v42, %v723_v20  ;;  %v2807_v46 = vld [vmem:[#allocation21_spill] sm:$0xff]  ;;  %v2817_v32 = vld [vmem:[#allocation78_spill] sm:$0xff] }
  0xbe   :  { %v698_v16 = vmax.f32 %v2803_v7, -100.0  ;;  %v976_v11 = vadd.f32 %v817_v27, %v816_v50  ;;  %v2805_v61 = vmax.f32 %v2762_v10, -100.0  ;;  %vm667_vm10 = vcmp.ge.f32.partialorder %v1182_v21, 16.635532  ;;  %v2810_v27 = vld [vmem:[#allocation22_spill] sm:$0xff] }
  0xbf   :  { %v2806_v53 = vsub.f32 %v2733_v6, %v1844_v60  ;;  %v729_v26 = vsel %vm665_vm7, -100.0, %v697_v19  ;;  %vm575_vm11 = vcmp.le.f32.partialorder %v1186_v14, -88.72284  ;;  %v760_v38 = vsub.f32 %v632_v37, %v728_v58 }
  0xc0   :  { %v633_v35 = vsel %vm569_vm14, -100.0, %v2805_v61  ;;  %v790_v3 = vmul.f32 %v758_v47, %v2807_v46  ;;  %v820_v48 = vadd.f32 %v788_v23, %v724_v18  ;;  %v977_v62 = vadd.f32 %v976_v11, %v818_v43  ;;  %v2813_v43 = vld [vmem:[#allocation23_spill] sm:$0xff]  ;;  %v2819_v11 = vld [vmem:[#allocation24_spill] sm:$0xff] }
  0xc1   :  { %v699_v54 = vmax.f32 %v2806_v53, -100.0  ;;  %v2808_v20 = vmax.f32 %v2763_v63, -100.0  ;;  %vm668_vm12 = vcmp.ge.f32.partialorder %v1183_v22, 16.635532  ;;  %v2809_v50 = vsub.f32 %v1770_v57, %v1870_v51  ;;  %v1188_v51 = vld [vmem:[#allocation3 + $0x88] sm:$0xff]  ;;  %v1190_v22 = vld [vmem:[#allocation3 + $0x98] sm:$0xff] }
  0xc2   :  { %v730_v60 = vsel %vm666_vm8, -100.0, %v698_v16  ;;  %vm576_vm13 = vcmp.le.f32.partialorder %v1187_v2, -88.72284  ;;  %v761_v6 = vsub.f32 %v633_v35, %v729_v26  ;;  %v791_v55 = vmul.f32 %v759_v34, %v2810_v27  ;;  %v2816_v34 = vld [vmem:[#allocation61_spill] sm:$0xff]  ;;  %v2822_v46 = vld [vmem:[#allocation64_spill] sm:$0xff] }
  0xc3   :  { %v634_v10 = vsel %vm570_vm0, -100.0, %v2808_v20  ;;  %v700_v42 = vmax.f32 %v2809_v50, -100.0  ;;  %v821_v19 = vadd.f32 %v789_v59, %v725_v5  ;;  %v978_v47 = vadd.f32 %v977_v62, %v819_v30  ;;  %v2814_v5 = vld [vmem:[#allocation88_spill] sm:$0xff]  ;;  %v2825_v50 = vld [vmem:[#allocation25_spill] sm:$0xff] }
  0xc4   :  { %v2811_v18 = vmax.f32 %v2764_v56, -100.0  ;;  %vm669_vm14 = vcmp.ge.f32.partialorder %v1184_v13, 16.635532  ;;  %v2812_v31 = vsub.f32 %v1782_v0, %v1872_v36  ;;  %v731_v57 = vsel %vm667_vm10, -100.0, %v699_v54  ;;  %v1189_v36 = vld [vmem:[#allocation3 + $0x90] sm:$0xff]  ;;  %v1191_v13 = vld [vmem:[#allocation3 + $0xa0] sm:$0xff] }
  0xc5   :  { %vm577_vm15 = vcmp.le.f32.partialorder %v1188_v51, -88.72284  ;;  %v762_v28 = vsub.f32 %v634_v10, %v730_v60  ;;  %v792_v44 = vmul.f32 %v760_v38, %v2813_v43  ;;  %v822_v37 = vadd.f32 %v790_v3, %v726_v49  ;;  %v2820_v49 = vld [vmem:[#allocation89_spill] sm:$0xff] }
  0xc6   :  { %v635_v63 = vsel %vm571_vm2, -100.0, %v2811_v18  ;;  %v701_v23 = vmax.f32 %v2812_v31, -100.0  ;;  %v979_v7 = vadd.f32 %v978_v47, %v820_v48  ;;  %v2815_v16 = vmax.f32 %v2814_v5, -100.0  ;;  %v2823_v3 = vld [vmem:[#allocation81_spill] sm:$0xff]  ;;  %v2828_v47 = vld [vmem:[#allocation67_spill] sm:$0xff]  ;;  %v2829_v18 = vld [vmem:[#allocation84_spill] sm:$0xff] }
  0xc7   :  { %vm670_vm0 = vcmp.ge.f32.partialorder %v1185_v52, 16.635532  ;;  %v2818_v59 = vsub.f32 %v2816_v34, %v2817_v32  ;;  %v732_v0 = vsel %vm668_vm12, -100.0, %v700_v42  ;;  %vm578_vm1 = vcmp.le.f32.partialorder %v1189_v36, -88.72284  ;;  %v2835_v34 = vld [vmem:[#allocation85_spill] sm:$0xff] }
  0xc8   :  { %v636_v56 = vsel %vm572_vm5, -100.0, %v2815_v16  ;;  %v763_v21 = vsub.f32 %v635_v63, %v731_v57  ;;  %v793_v61 = vmul.f32 %v761_v6, %v2819_v11  ;;  %v823_v35 = vadd.f32 %v791_v55, %v727_v8  ;;  %v2826_v8 = vld [vmem:[#allocation93_spill] sm:$0xff] }
  0xc9   :  { %v702_v30 = vmax.f32 %v2818_v59, -100.0  ;;  %v980_v53 = vadd.f32 %v979_v7, %v821_v19  ;;  %v2821_v54 = vmax.f32 %v2820_v49, -100.0  ;;  %vm671_vm2 = vcmp.ge.f32.partialorder %v1186_v14, 16.635532  ;;  %v2831_v7 = vld [vmem:[#allocation26_spill] sm:$0xff]  ;;  %v1192_v52 = vld [vmem:[#allocation3 + $0xa8] sm:$0xff] }
  0xca   :  { %v2824_v48 = vsub.f32 %v2822_v46, %v2823_v3  ;;  %v733_v20 = vsel %vm669_vm14, -100.0, %v701_v23  ;;  %vm579_vm3 = vcmp.le.f32.partialorder %v1190_v22, -88.72284  ;;  %v764_v10 = vsub.f32 %v636_v56, %v732_v0  ;;  %v2834_v56 = vld [vmem:[#allocation69_spill] sm:$0xff]  ;;  %v2841_v46 = vld [vmem:[#allocation87_spill] sm:$0xff] }
  0xcb   :  { %v637_v38 = vsel %vm573_vm6, -100.0, %v2821_v54  ;;  %v794_v42 = vmul.f32 %v762_v28, %v2825_v50  ;;  %v824_v27 = vadd.f32 %v792_v44, %v728_v58  ;;  %v981_v6 = vadd.f32 %v980_v53, %v822_v37  ;;  %v2832_v58 = vld [vmem:[#allocation96_spill] sm:$0xff]  ;;  %v2837_v53 = vld [vmem:[#allocation29_spill] sm:$0xff] }
  0xcc   :  { %v703_v62 = vmax.f32 %v2824_v48, -100.0  ;;  %v2827_v55 = vmax.f32 %v2826_v8, -100.0  ;;  %vm672_vm4 = vcmp.ge.f32.partialorder %v1187_v2, 16.635532  ;;  %v2830_v63 = vsub.f32 %v2828_v47, %v2829_v18  ;;  %v1193_v14 = vld [vmem:[#allocation3 + $0xb0] sm:$0xff]  ;;  %v2847_v47 = vld [vmem:[#allocation91_spill] sm:$0xff] }
  0xcd   :  { %v734_v43 = vsel %vm670_vm0, -100.0, %v702_v30  ;;  %vm580_vm5 = vcmp.le.f32.partialorder %v1191_v13, -88.72284  ;;  %v765_v23 = vsub.f32 %v637_v38, %v733_v20  ;;  %v795_v5 = vmul.f32 %v763_v21, %v2831_v7  ;;  %v2840_v38 = vld [vmem:[#allocation71_spill] sm:$0xff] }
  0xce   :  { %v638_v19 = vsel %vm574_vm9, -100.0, %v2827_v55  ;;  %v704_v31 = vmax.f32 %v2830_v63, -100.0  ;;  %v825_v16 = vadd.f32 %v793_v61, %v729_v26  ;;  %v982_v28 = vadd.f32 %v981_v6, %v823_v35  ;;  %v2838_v26 = vld [vmem:[#allocation100_spill] sm:$0xff]  ;;  %v2843_v6 = vld [vmem:[#allocation30_spill] sm:$0xff] }
  0xcf   :  { %v2833_v44 = vmax.f32 %v2832_v58, -100.0  ;;  %vm673_vm6 = vcmp.ge.f32.partialorder %v1188_v51, 16.635532  ;;  %v2836_v32 = vsub.f32 %v2834_v56, %v2835_v34  ;;  %v735_v11 = vsel %vm671_vm2, -100.0, %v703_v62  ;;  %v1194_v2 = vld [vmem:[#allocation3 + $0xb8] sm:$0xff]  ;;  %v2853_v56 = vld [vmem:[#allocation92_spill] sm:$0xff] }
  0xd0   :  { %vm581_vm7 = vcmp.le.f32.partialorder %v1192_v52, -88.72284  ;;  %v766_v30 = vsub.f32 %v638_v19, %v734_v43  ;;  %v796_v49 = vmul.f32 %v764_v10, %v2837_v53  ;;  %v826_v54 = vadd.f32 %v794_v42, %v730_v60  ;;  %v2844_v60 = vld [vmem:[#allocation101_spill] sm:$0xff]  ;;  %v1195_v51 = vld [vmem:[#allocation3 + $0xc0] sm:$0xff] }
  0xd1   :  { %v639_v37 = vsel %vm575_vm11, -100.0, %v2833_v44  ;;  %v705_v59 = vmax.f32 %v2836_v32, -100.0  ;;  %v983_v21 = vadd.f32 %v982_v28, %v824_v27  ;;  %v2839_v61 = vmax.f32 %v2838_v26, -100.0  ;;  %v2846_v19 = vld [vmem:[#allocation73_spill] sm:$0xff]  ;;  %v2849_v28 = vld [vmem:[#allocation31_spill] sm:$0xff] }
  0xd2   :  { %vm674_vm8 = vcmp.ge.f32.partialorder %v1189_v36, 16.635532  ;;  %v2842_v3 = vsub.f32 %v2840_v38, %v2841_v46  ;;  %v736_v50 = vsel %vm672_vm4, -100.0, %v704_v31  ;;  %vm582_vm9 = vcmp.le.f32.partialorder %v1193_v14, -88.72284  ;;  %v1196_v36 = vld [vmem:[#allocation3 + $0xc8] sm:$0xff] }
  0xd3   :  { %v640_v35 = vsel %vm576_vm13, -100.0, %v2839_v61  ;;  %v767_v62 = vsub.f32 %v639_v37, %v735_v11  ;;  %v797_v8 = vmul.f32 %v765_v23, %v2843_v6  ;;  %v827_v55 = vadd.f32 %v795_v5, %v731_v57  ;;  %v2850_v57 = vld [vmem:[#allocation104_spill] sm:$0xff]  ;;  %v2852_v37 = vld [vmem:[#allocation75_spill] sm:$0xff] }
  0xd4   :  { %v706_v48 = vmax.f32 %v2842_v3, -100.0  ;;  %v984_v10 = vadd.f32 %v983_v21, %v825_v16  ;;  %v2845_v42 = vmax.f32 %v2844_v60, -100.0  ;;  %vm675_vm10 = vcmp.ge.f32.partialorder %v1190_v22, 16.635532  ;;  %v2855_v21 = vld [vmem:[#allocation32_spill] sm:$0xff]  ;;  %v1197_v22 = vld [vmem:[#allocation3 + $0xd0] sm:$0xff] }
  0xd5   :  { %v2848_v18 = vsub.f32 %v2846_v19, %v2847_v47  ;;  %v737_v7 = vsel %vm673_vm6, -100.0, %v705_v59  ;;  %vm583_vm11 = vcmp.le.f32.partialorder %v1194_v2, -88.72284  ;;  %v768_v31 = vsub.f32 %v640_v35, %v736_v50  ;;  %v2858_v35 = vld [vmem:[#allocation95_spill] sm:$0xff]  ;;  %v2860_v6 = vld [vmem:[#allocation36_spill] sm:$0xff] }
  0xd6   :  { %v641_v27 = vsel %vm577_vm15, -100.0, %v2845_v42  ;;  %v798_v58 = vmul.f32 %v766_v30, %v2849_v28  ;;  %v828_v44 = vadd.f32 %v796_v49, %v732_v0  ;;  %v985_v23 = vadd.f32 %v984_v10, %v826_v54  ;;  %v2857_v54 = vld [vmem:[#allocation76_spill] sm:$0xff] }
  0xd7   :  { %v707_v63 = vmax.f32 %v2848_v18, -100.0  ;;  %v2851_v5 = vmax.f32 %v2850_v57, -100.0  ;;  %vm676_vm12 = vcmp.ge.f32.partialorder %v1191_v13, 16.635532  ;;  %v2854_v34 = vsub.f32 %v2852_v37, %v2853_v56  ;;  %v2865_v18 = vld [vmem:[#allocation37_spill] sm:$0xff]  ;;  %v1198_v13 = vld [vmem:[#allocation3 + $0xd8] sm:$0xff] }
  0xd8   :  { %v738_v53 = vsel %vm674_vm8, -100.0, %v706_v48  ;;  %vm584_vm13 = vcmp.le.f32.partialorder %v1195_v51, -88.72284  ;;  %v769_v59 = vsub.f32 %v641_v27, %v737_v7  ;;  %v799_v26 = vmul.f32 %v767_v62, %v2855_v21  ;;  %v2870_v37 = vld [vmem:[#allocation38_spill] sm:$0xff]  ;;  %v2873_v21 = vld [vmem:[#allocation27_spill] sm:$0xff] }
  0xd9   :  { %v642_v16 = vsel %vm578_vm1, -100.0, %v2851_v5  ;;  %v708_v32 = vmax.f32 %v2854_v34, -100.0  ;;  %v829_v61 = vadd.f32 %v797_v8, %v733_v20  ;;  %v986_v30 = vadd.f32 %v985_v23, %v827_v55  ;;  %v2862_v8 = vld [vmem:[#allocation80_spill] sm:$0xff]  ;;  %v2863_v55 = vld [vmem:[#allocation99_spill] sm:$0xff] }
  0xda   :  { %v2856_v0 = vmax.f32 %v2777_v15, -100.0  ;;  %vm677_vm14 = vcmp.ge.f32.partialorder %v1192_v52, 16.635532  ;;  %v2859_v38 = vsub.f32 %v2857_v54, %v2858_v35  ;;  %v739_v3 = vsel %vm675_vm10, -100.0, %v707_v63  ;;  %v1199_v52 = vld [vmem:[#allocation3 + $0xe0] sm:$0xff] }
  0xdb   :  { %vm585_vm15 = vcmp.le.f32.partialorder %v1196_v36, -88.72284  ;;  %v770_v48 = vsub.f32 %v642_v16, %v738_v53  ;;  %v800_v10 = vmul.f32 %v768_v31, %v2860_v6  ;;  %v830_v60 = vadd.f32 %v798_v58, %v734_v43  ;;  %v2867_v58 = vld [vmem:[#allocation83_spill] sm:$0xff] }
  0xdc   :  { %v643_v49 = vsel %vm579_vm3, -100.0, %v2856_v0  ;;  %v709_v46 = vmax.f32 %v2859_v38, -100.0  ;;  %v987_v62 = vadd.f32 %v986_v30, %v828_v44  ;;  %v2861_v20 = vmax.f32 %v2781_v39, -100.0  ;;  %v2868_v44 = vld [vmem:[#allocation103_spill] sm:$0xff] }
  0xdd   :  { %vm678_vm0 = vcmp.ge.f32.partialorder %v1193_v14, 16.635532  ;;  %v2864_v42 = vsub.f32 %v2862_v8, %v2863_v55  ;;  %v740_v19 = vsel %vm676_vm12, -100.0, %v708_v32  ;;  %vm586_vm1 = vcmp.le.f32.partialorder %v1197_v22, -88.72284  ;;  %v1200_v14 = vld [vmem:[#allocation3 + $0xe8] sm:$0xff] }
  0xde   :  { %v644_v15 = vsel %vm580_vm5, -100.0, %v2861_v20  ;;  %v771_v47 = vsub.f32 %v643_v49, %v739_v3  ;;  %v801_v63 = vmul.f32 %v769_v59, %v2865_v18  ;;  %v831_v28 = vadd.f32 %v799_v26, %v735_v11  ;;  %v2872_v59 = vld [vmem:[#allocation86_spill] sm:$0xff]  ;;  %v2875_v49 = vld [vmem:[#allocation39_spill] sm:$0xff] }
  0xdf   :  { %v710_v27 = vmax.f32 %v2864_v42, -100.0  ;;  %v988_v31 = vadd.f32 %v987_v62, %v829_v61  ;;  %v2866_v43 = vmax.f32 %v2782_v33, -100.0  ;;  %vm679_vm2 = vcmp.ge.f32.partialorder %v1194_v2, 16.635532  ;;  %v2880_v20 = vld [vmem:[#allocation43_spill] sm:$0xff]  ;;  %v2882_v42 = vld [vmem:[#allocation94_spill] sm:$0xff] }
  0xe0   :  { %v2869_v23 = vsub.f32 %v2867_v58, %v2868_v44  ;;  %v741_v5 = vsel %vm677_vm14, -100.0, %v709_v46  ;;  %vm587_vm3 = vcmp.le.f32.partialorder %v1198_v13, -88.72284  ;;  %v772_v16 = vsub.f32 %v644_v15, %v740_v19  ;;  %v2877_v46 = vld [vmem:[#allocation90_spill] sm:$0xff]  ;;  %v2887_v44 = vld [vmem:[#allocation97_spill] sm:$0xff] }
  0xe1   :  { %v645_v39 = vsel %vm581_vm7, -100.0, %v2866_v43  ;;  %v802_v56 = vmul.f32 %v770_v48, %v2870_v37  ;;  %v832_v34 = vadd.f32 %v800_v10, %v736_v50  ;;  %v989_v32 = vadd.f32 %v988_v31, %v830_v60  ;;  %v2878_v48 = vld [vmem:[#allocation33_spill] sm:$0xff]  ;;  %v2885_v31 = vld [vmem:[#allocation44_spill] sm:$0xff] }
  0xe2   :  { %v711_v57 = vmax.f32 %v2869_v23, -100.0  ;;  %v2871_v11 = vmax.f32 %v2783_v45, -100.0  ;;  %vm680_vm4 = vcmp.ge.f32.partialorder %v1195_v51, 16.635532  ;;  %v2874_v26 = vsub.f32 %v2872_v59, %v2873_v21  ;;  %v1201_v2 = vld [vmem:[#allocation3 + $0xf0] sm:$0xff]  ;;  %v2888_v23 = vld [vmem:[#allocation40_spill] sm:$0xff] }
  0xe3   :  { %v742_v30 = vsel %vm678_vm0, -100.0, %v710_v27  ;;  %vm588_vm5 = vcmp.le.f32.partialorder %v1199_v52, -88.72284  ;;  %v773_v0 = vsub.f32 %v645_v39, %v741_v5  ;;  %v803_v54 = vmul.f32 %v771_v47, %v2875_v49  ;;  %v2883_v27 = vld [vmem:[#allocation35_spill] sm:$0xff]  ;;  %v2892_v59 = vld [vmem:[#allocation98_spill] sm:$0xff]  ;;  %v2893_v21 = vld [vmem:[#allocation41_spill] sm:$0xff] }
  0xe4   :  { %v646_v33 = vsel %vm582_vm9, -100.0, %v2871_v11  ;;  %v712_v61 = vmax.f32 %v2874_v26, -100.0  ;;  %v833_v35 = vadd.f32 %v801_v63, %v737_v7  ;;  %v990_v38 = vadd.f32 %v989_v32, %v831_v28  ;;  %v1202_v51 = vld [vmem:[#allocation3 + $0xf8] sm:$0xff] }
  0xe5   :  { %v2876_v50 = vmax.f32 %v2029_v24, -100.0  ;;  %vm681_vm6 = vcmp.ge.f32.partialorder %v1196_v36, 16.635532  ;;  %v2879_v6 = vsub.f32 %v2877_v46, %v2878_v48  ;;  %v743_v60 = vsel %vm679_vm2, -100.0, %v711_v57  ;;  %v2895_v49 = vld [vmem:[#allocation51_spill] sm:$0xff] }
  0xe6   :  { %vm589_vm7 = vcmp.le.f32.partialorder %v1200_v14, -88.72284  ;;  %v774_v62 = vsub.f32 %v646_v33, %v742_v30  ;;  %v804_v15 = vmul.f32 %v772_v16, %v2880_v20  ;;  %v834_v8 = vadd.f32 %v802_v56, %v738_v53 }
  0xe7   :  { %v647_v45 = vsel %vm583_vm11, -100.0, %v2876_v50  ;;  %v713_v10 = vmax.f32 %v2879_v6, -100.0  ;;  %v991_v55 = vadd.f32 %v990_v38, %v832_v34  ;;  %v2881_v7 = vmax.f32 %v2048_v17, -100.0  ;;  %v2890_v34 = vld [vmem:[#allocation48_spill] sm:$0xff] }
  0xe8   :  { %vm682_vm8 = vcmp.ge.f32.partialorder %v1197_v22, 16.635532  ;;  %v2884_v47 = vsub.f32 %v2882_v42, %v2883_v27  ;;  %v744_v63 = vsel %vm680_vm4, -100.0, %v712_v61  ;;  %vm590_vm9 = vcmp.le.f32.partialorder %v1201_v2, -88.72284 }
  0xe9   :  { %v648_v24 = vsel %vm584_vm13, -100.0, %v2881_v7  ;;  %v775_v28 = vsub.f32 %v647_v45, %v743_v60  ;;  %v805_v43 = vmul.f32 %v773_v0, %v2885_v31  ;;  %v835_v39 = vadd.f32 %v803_v54, %v739_v3  ;;  %v2898_v45 = vld [vmem:[#allocation46_spill] sm:$0xff] }
  0xea   :  { %v714_v18 = vmax.f32 %v2884_v47, -100.0  ;;  %v992_v58 = vadd.f32 %v991_v55, %v833_v35  ;;  %v2886_v53 = vmax.f32 %v2059_v1, -100.0  ;;  %vm683_vm10 = vcmp.ge.f32.partialorder %v1198_v13, 16.635532  ;;  %v2903_v55 = vld [vmem:[#allocation12_spill] sm:$0xff]  ;;  %v2905_v47 = vld [vmem:[#allocation53_spill] sm:$0xff] }
  0xeb   :  { %v2889_v57 = vsub.f32 %v2887_v44, %v2888_v23  ;;  %v745_v37 = vsel %vm681_vm6, -100.0, %v713_v10  ;;  %vm591_vm11 = vcmp.le.f32.partialorder %v1202_v51, -88.72284  ;;  %v776_v56 = vsub.f32 %v648_v24, %v744_v63  ;;  %v2910_v44 = vld [vmem:[#allocation54_spill] sm:$0xff] }
  0xec   :  { %v649_v17 = vsel %vm585_vm15, -100.0, %v2886_v53  ;;  %v806_v32 = vmul.f32 %v774_v62, %v2890_v34  ;;  %v836_v11 = vadd.f32 %v804_v15, %v740_v19  ;;  %v993_v33 = vadd.f32 %v992_v58, %v834_v8  ;;  %v2900_v62 = vld [vmem:[#allocation52_spill] sm:$0xff] }
  0xed   :  { %v715_v16 = vmax.f32 %v2889_v57, -100.0  ;;  %v2891_v3 = vmax.f32 %v2070_v12, -100.0  ;;  %vm684_vm12 = vcmp.ge.f32.partialorder %v1199_v52, 16.635532  ;;  %v2894_v26 = vsub.f32 %v2892_v59, %v2893_v21  ;;  %v2897_v12 = vld [vmem:[#allocation102_spill] sm:$0xff] }
  0xee   :  { %v746_v0 = vsel %vm682_vm8, -100.0, %v714_v18  ;;  %v777_v36 = vsub.f32 %v649_v17, %v745_v37  ;;  %v807_v54 = vmul.f32 %v775_v28, %v2895_v49  ;;  %v837_v35 = vadd.f32 %v805_v43, %v741_v5  ;;  %v2908_v43 = vld [vmem:[#allocation13_spill] sm:$0xff] }
  0xef   :  { %v650_v1 = vsel %vm586_vm1, -100.0, %v2891_v3  ;;  %v716_v61 = vmax.f32 %v2894_v26, -100.0  ;;  %v994_v38 = vadd.f32 %v993_v33, %v835_v39  ;;  %v2896_v50 = vmax.f32 %v2079_v40, -100.0  ;;  %v2902_v40 = vld [vmem:[#allocation49_spill] sm:$0xff] }
  0xf0   :  { %vm685_vm13 = vcmp.ge.f32.partialorder %v1200_v14, 16.635532  ;;  %v2899_v46 = vsub.f32 %v2897_v12, %v2898_v45  ;;  %v747_v6 = vsel %vm683_vm10, -100.0, %v715_v16  ;;  %v778_v10 = vsub.f32 %v650_v1, %v746_v0  ;;  %v1203_v16 = vld [vmem:[#allocation6 + $0x38] sm:$0xff] }
  0xf1   :  { %v651_v19 = vsel %vm587_vm3, -100.0, %v2896_v50  ;;  %v808_v22 = vmul.f32 %v776_v56, %v2900_v62  ;;  %v838_v20 = vadd.f32 %v806_v32, %v742_v30  ;;  %v995_v15 = vadd.f32 %v994_v38, %v836_v11  ;;  %v2914_v1 = vld [vmem:[#allocation55_spill] sm:$0xff] }
  0xf2   :  { %v717_v48 = vmax.f32 %v2899_v46, -100.0  ;;  %v2901_v8 = vmax.f32 %v2084_v29, -100.0  ;;  %vm686_vm14 = vcmp.ge.f32.partialorder %v1201_v2, 16.635532  ;;  %v2904_v7 = vsub.f32 %v2902_v40, %v2903_v55  ;;  %v2907_v29 = vld [vmem:[#allocation105_spill] sm:$0xff] }
  0xf3   :  { %v748_v42 = vsel %vm684_vm12, -100.0, %v716_v61  ;;  %v779_v27 = vsub.f32 %v651_v19, %v747_v6  ;;  %v809_v13 = vmul.f32 %v777_v36, %v2905_v47  ;;  %v839_v18 = vadd.f32 %v807_v54, %v743_v60  ;;  %v2911_v60 = vld [vmem:[#allocation14_spill] sm:$0xff] }
  0xf4   :  { %v652_v5 = vsel %vm588_vm5, -100.0, %v2901_v8  ;;  %v718_v24 = vmax.f32 %v2904_v7, -100.0  ;;  %v996_v28 = vadd.f32 %v995_v15, %v837_v35  ;;  %v2906_v31 = vmax.f32 %v2093_v41, -100.0 }
  0xf5   :  { %vm687_vm15 = vcmp.ge.f32.partialorder %v1202_v51, 16.635532  ;;  %v2909_v39 = vsub.f32 %v2907_v29, %v2908_v43  ;;  %v749_v53 = vsel %vm685_vm13, -100.0, %v717_v48  ;;  %v780_v17 = vsub.f32 %v652_v5, %v748_v42 }
  0xf6   :  { %v653_v30 = vsel %vm589_vm7, -100.0, %v2906_v31  ;;  %v810_v52 = vmul.f32 %v778_v10, %v2910_v44  ;;  %v840_v23 = vadd.f32 %v808_v22, %v744_v63  ;;  %v997_v57 = vadd.f32 %v996_v28, %v838_v20 }
  0xf7   :  { %v719_v58 = vmax.f32 %v2909_v39, -100.0  ;;  %v143_v56 = vunpack.c.3.s8 %v1203_v16  ;;  %v2912_v34 = vunpack.c.1.s8 %v2911_v60  ;;  %v2913_v41 = vmax.f32 %v2104_v25, -100.0  ;;  %v2916_v25 = vld [vmem:[#allocation56_spill] sm:$0xff] }
  0xf8   :  { %v750_v33 = vsel %vm686_vm14, -100.0, %v718_v24  ;;  %v781_v3 = vsub.f32 %v653_v30, %v749_v53  ;;  %v811_v14 = vmul.f32 %v779_v27, %v2914_v1  ;;  %v841_v59 = vadd.f32 %v809_v13, %v745_v37 }
  0xf9   :  { %v173_v32 = vcvt.s32.f32 %v2912_v34  ;;  %v654_v11 = vsel %vm590_vm9, -100.0, %v2913_v41  ;;  %v998_v21 = vadd.f32 %v997_v57, %v839_v18  ;;  %v2915_v26 = vunpack.c.2.s8 %v2911_v60 }
  0xfa   :  { %v655_v61 = vsel %vm591_vm11, -100.0, %v623_v9  ;;  %v751_v36 = vsel %vm687_vm15, -100.0, %v719_v58  ;;  %v782_v49 = vsub.f32 %v654_v11, %v750_v33  ;;  %v812_v54 = vmul.f32 %v780_v17, %v2916_v25 }
  0xfb   :  { %v174_v63 = vcvt.s32.f32 %v2915_v26  ;;  %v842_v35 = vadd.f32 %v810_v52, %v746_v0  ;;  %v999_v2 = vadd.f32 %v998_v21, %v840_v23  ;;  %v175_v38 = vcvt.s32.f32 %v143_v56 }
  0xfc   :  { %v783_v50 = vsub.f32 %v655_v61, %v751_v36  ;;  %v813_v19 = vmul.f32 %v781_v3, %v173_v32  ;;  %v843_v12 = vadd.f32 %v811_v14, %v747_v6  ;;  %v844_v46 = vadd.f32 %v812_v54, %v748_v42 }
  0xfd   :  { %v1000_v37 = vadd.f32 %v999_v2, %v841_v59  ;;  %v814_v45 = vmul.f32 %v782_v49, %v174_v63  ;;  %vm1018_vm0 = vcmask 0  }
  0xfe   :  { %v815_v10 = vmul.f32 %v783_v50, %v175_v38  ;;  %v845_v62 = vadd.f32 %v813_v19, %v749_v53 }
  0xff   :  { %v1001_v48 = vadd.f32 %v1000_v37, %v842_v35  ;;  %v846_v22 = vadd.f32 %v814_v45, %v750_v33 }
 0x100   :  { %v847_v51 = vadd.f32 %v815_v10, %v751_v36 }
 0x101   :  { %v1002_v4 = vadd.f32 %v1001_v48, %v843_v12 }
 0x103   :  { %v1003_v9 = vadd.f32 %v1002_v4, %v844_v46 }
 0x105   :  { %v1004_v20 = vadd.f32 %v1003_v9, %v845_v62 }
 0x107   :  { %v1005_v15 = vadd.f32 %v1004_v20, %v846_v22 }
 0x109   :  { %v1006_v8 = vadd.f32 %v1005_v15, %v847_v51 }
 0x10b   :  { %1007 = vadd.xlane.f32.xlu0 %v1006_v8 }
 0x198   :  { %v1008_v0 = vpop.xlane.xlu0 %1007 }
 0x199   :  { %v1009_v5 = vrot.slane %v1008_v0, 4 }
 0x19b   :  { %v1010_v40 = vadd.f32 %v1009_v5, %v1008_v0 }
 0x19d   :  { %v1011_v55 = vrot.slane %v1010_v40, 2 }
 0x19f   :  { %v1012_v7 = vadd.f32 %v1011_v55, %v1010_v40 }
 0x1a1   :  { %v1013_v6 = vrot.slane %v1012_v7, 1 }
 0x1a3   :  { %v1014_v24 = vadd.f32 %v1013_v6, %v1012_v7 }
 0x1a5   :  { %1036 = vpush %v1014_v24 }
 0x1d6   :  { %s1037_s7 = spop %1036 }
 0x1d7   :  { %s1016_s8 = ssub.f32 0.0, %s1037_s7 }
 0x1d9   :  { %v1017_v42 = vstv %s1016_s8 }
 0x1da   :  { %1019 = vst.msk [vmem:[#allocation8] sm:$0x1] %vm1018_vm0, %v1017_v42 }
 0x1db   :  { %1259 = shalt.err (!%p1256_p6)
}
 0x1dc   :  { %s1260_s13 = scalar_lea.hbm %s2421_s2, 16 }
 0x1dd   :  { %p1261_p7 = scmp.ne.s32.totalorder %s2421_s2, %s1260_s13  ;;  %p1264_p8 = scmp.lt.u32.totalorder %s1260_s13, %s2421_s2 }
 0x1df   :  { %p1266_p9 = pnand %p1264_p8, %p1261_p7 }
 0x1e1   :  { %1269 = shalt.err (!%p1266_p9)
}
 0x1e2   :  { %1029 = dma.vmem_to_hbm [thread:$0]  %s1027_s6, 16, %s2421_s2, [#allocation5]  }
 0x1e3   :  { %1274 = dma.done.wait [#allocation5], 16  }
 0x1e4   :  { %1275 = vsyncadd [#allocation5], 4294967280 }
 0x1e5   :  { %1033 = vsyncpa [#allocation4], 1 }
 0x1e6   :  { %1034 = vsyncpa [#allocation7], 1 }
 0x1e7   :  { %1035 = vsyncpa [#allocation5], 1 }

</bundles_post_ra>
